<compile_context>
chip_gen: v6e
topology: v6e:2x2x1
jax: 0.10.0
libtpu: 0.0.40
codegen_flags: <defaults>
</compile_context>

<pallas_src>
import jax
import jax.numpy as jnp
from jax.experimental import pallas as pl
from jax.experimental.pallas import tpu as pltpu


# ---------------------------------------------------------------------------
# Backbone + pooling kernel: pre-LN causal transformer block, final LayerNorm,
# then fused max / masked-mean pooling.  One grid step processes Bb sequences.
# ---------------------------------------------------------------------------
def _backbone_pool_kernel(x_ref, mask_ref,
                          wqkv_ref, wo_ref,
                          w1_ref, b1_ref, w2_ref, b2_ref,
                          ln1_g_ref, ln1_b_ref,
                          ln2_g_ref, ln2_b_ref,
                          lnf_g_ref, lnf_b_ref,
                          o_ref):
    x = x_ref[...].astype(jnp.float32)       # (Bb, S, H); DMA'd as bf16
    Bb, S, H = x.shape
    mask3 = mask_ref[...]                    # (Bb, 1, S) f32

    def ln(v, g_ref, b_ref):                 # v: (M, H), f32 math
        mu = jnp.mean(v, axis=-1, keepdims=True)
        var = jnp.mean((v - mu) ** 2, axis=-1, keepdims=True)
        return (v - mu) * jax.lax.rsqrt(var + 1e-5) * g_ref[...] + b_ref[...]

    x2 = x.reshape(Bb * S, H)                # flatten batch*seq -> fill MXU M dim

    # --- self attention (single head), fused QKV; 1/sqrt(H) folded into wq ---
    h = ln(x2, ln1_g_ref, ln1_b_ref)
    qkv = jnp.dot(h.astype(jnp.bfloat16), wqkv_ref[...],
                  preferred_element_type=jnp.float32)           # (Bb*S, 3H) f32
    qkv_bf = qkv.astype(jnp.bfloat16)                           # one cast pass
    q = qkv_bf[:, 0 * H:1 * H].reshape(Bb, S, H)
    k = qkv_bf[:, 1 * H:2 * H].reshape(Bb, S, H)
    v = qkv_bf[:, 2 * H:3 * H].reshape(Bb, S, H)

    # batched q·kᵀ: contract H axes directly (no explicit transpose)
    scores = jnp.einsum('bqd,bkd->bqk', q, k,
                        preferred_element_type=jnp.float32)     # (Bb, S, S) f32
    # pad mask applied additively; causal mask is a single 2-D (S,S) pattern
    scores = scores + (mask3 - 1.0) * jnp.float32(1e9)
    causal = (jax.lax.broadcasted_iota(jnp.int32, (S, S), 1)
              <= jax.lax.broadcasted_iota(jnp.int32, (S, S), 0))
    scores = jnp.where(causal[None], scores, jnp.float32(-1e9))
    # TODO(synk): for long S, tile over query rows (flash-style online softmax)
    # instead of materializing the (S, S) score matrix.
    m = jnp.max(scores, axis=-1, keepdims=True)
    e = jnp.exp(scores - m)
    p = e * pl.reciprocal(jnp.sum(e, axis=-1, keepdims=True), approx=True)
    att = jnp.einsum('bqk,bkd->bqd', p.astype(jnp.bfloat16), v,
                     preferred_element_type=jnp.float32)        # (Bb, S, H)
    att2 = jnp.dot(att.reshape(Bb * S, H).astype(jnp.bfloat16), wo_ref[...],
                   preferred_element_type=jnp.float32)
    x2 = x2 + att2

    # --- MLP (GELU) ---
    h2 = ln(x2, ln2_g_ref, ln2_b_ref)
    ff = jnp.dot(h2.astype(jnp.bfloat16), w1_ref[...],
                 preferred_element_type=jnp.float32) + b1_ref[...]
    ff = jax.nn.gelu(ff, approximate=True)
    ff = jnp.dot(ff.astype(jnp.bfloat16), w2_ref[...],
                 preferred_element_type=jnp.float32) + b2_ref[...]
    x2 = x2 + ff

    # --- final LayerNorm + fused pooling ---
    hf = ln(x2, lnf_g_ref, lnf_b_ref).reshape(Bb, S, H)
    mask2 = mask3[:, 0, :]                                      # (Bb, S)
    out_max = jnp.max(hf, axis=1)                               # unmasked (= torch.max(dim=1))
    msum = jnp.maximum(jnp.sum(mask2, axis=1, keepdims=True), 1.0)   # NaN guard
    out_mean = jnp.sum(hf * mask2[:, :, None], axis=1) * pl.reciprocal(msum, approx=True)
    o_ref[:, 0, :] = out_max
    o_ref[:, 1, :] = out_mean


# ---------------------------------------------------------------------------
# VMEM budgeting / batch-block selection.
# ---------------------------------------------------------------------------
def _vmem_budget_bytes():
    """~75% of physical VMEM (v5e/v6e 128MiB->96MiB, v7x 64MiB->48MiB),
    leaving headroom for Mosaic internal scratch."""
    try:
        cap = pltpu.get_tpu_info().vmem_capacity_bytes
    except Exception:
        cap = 64 * 2 ** 20        # conservative fallback
    return int(cap) * 3 // 4


def _weight_bytes(h):
    bf16, f32 = 2, 4
    return (3 * h * h + h * h + 4 * h * h + 4 * h * h) * bf16 \
        + (4 * h + 2 * h + 6 * h) * f32


def _act_bytes(bb, s, h):
    # rough f32 live-temp footprint per grid step (residual/qkv/att/ff slabs
    # + score/softmax matrices).
    rows = bb * s
    return 4 * (rows * 16 * h + bb * s * s * 2)


def _choose_batch_block(B, S, H, budget):
    # Fill the MXU M dimension (Bb*S >= ~256 rows), bounded by the VMEM budget.
    # TODO(synk): on v5e also round Bb*S to a multiple of 128 (4x128 MXU).
    bb = max(1, pl.cdiv(256, S))
    while bb > 1 and _act_bytes(bb, S, H) + _weight_bytes(H) > budget // 2:
        bb -= 1
    if B >= 2:
        bb = min(bb, max(1, B // 2))   # grid >= 2 so both v7x TensorCores get work
    return max(1, min(bb, B))


def _vmem_limit_bytes(bb, s, h, budget, weight_buffers):
    f32, bf16 = 4, 2
    weights = _weight_bytes(h) * weight_buffers                    # 1 or 2 buffers
    io = 2 * (bb * s * h * bf16 + bb * s * f32 + bb * 2 * h * f32)  # double-buffered tiles
    est = weights + io + _act_bytes(bb, s, h) + (4 << 20)           # + compiler scratch
    return int(min(budget, max(32 << 20, est)))


def backbone_pool_forward(x_emb, attn_mask, params, *, single_buffer_weights=True):
    """x_emb: (B, S, H); attn_mask: (B, S) f32 -> pooled (B, 2, H) f32."""
    B, S, H = x_emb.shape
    x_emb = x_emb.astype(jnp.bfloat16)          # halve the dominant input DMA
    budget = _vmem_budget_bytes()
    bb = _choose_batch_block(B, S, H, budget)

    # pad B up to a multiple of bb instead of shrinking bb (keeps MXU M filled)
    Bp = pl.cdiv(B, bb) * bb
    if Bp != B:
        x_emb = jnp.pad(x_emb, ((0, Bp - B), (0, 0), (0, 0)))
        attn_mask = jnp.pad(attn_mask, ((0, Bp - B), (0, 0)))
    mask3 = attn_mask.reshape(Bp, 1, S)
    p = params

    if single_buffer_weights:
        # grid-invariant weights: one VMEM buffer is enough (nothing to prefetch)
        def wspec(shape):
            return pl.BlockSpec(shape, lambda b: (0,) * len(shape),
                                pipeline_mode=pl.Buffered(1))
    else:
        def wspec(shape):
            return pl.BlockSpec(shape, lambda b: (0,) * len(shape))

    out = pl.pallas_call(
        _backbone_pool_kernel,
        out_shape=jax.ShapeDtypeStruct((Bp, 2, H), jnp.float32),
        grid=(Bp // bb,),
        in_specs=[
            pl.BlockSpec((bb, S, H), lambda b: (b, 0, 0)),  # x (bf16)
            pl.BlockSpec((bb, 1, S), lambda b: (b, 0, 0)),  # mask
            wspec((H, 3 * H)), wspec((H, H)),               # wqkv, wo
            wspec((H, 4 * H)), wspec((1, 4 * H)),           # w1, b1
            wspec((4 * H, H)), wspec((1, H)),               # w2, b2
            wspec((1, H)), wspec((1, H)),                   # ln1 g/b
            wspec((1, H)), wspec((1, H)),                   # ln2 g/b
            wspec((1, H)), wspec((1, H)),                   # lnf g/b
        ],
        out_specs=pl.BlockSpec((bb, 2, H), lambda b: (b, 0, 0)),
        compiler_params=pltpu.CompilerParams(
            dimension_semantics=("parallel",),
            vmem_limit_bytes=_vmem_limit_bytes(
                bb, S, H, budget, 1 if single_buffer_weights else 2)),
    )(x_emb, mask3,
      p["wqkv"], p["wo"], p["w1"], p["b1"], p["w2"], p["b2"],
      p["ln1_g"], p["ln1_b"], p["ln2_g"], p["ln2_b"], p["lnf_g"], p["lnf_b"])
    return out[:B]


# ---------------------------------------------------------------------------
# Classifier head in plain XLA: BatchNorm1d (eval) -> Dropout(identity) -> Linear.
# Operates on the tiny (B, 2H) pooled features; no Pallas kernel needed.
# ---------------------------------------------------------------------------
def classifier_head(pooled, params):
    B = pooled.shape[0]
    feat = pooled.reshape(B, -1)          # == concat([out_max, out_mean], -1)
    x = (feat - params["bn_mean"]) * jax.lax.rsqrt(params["bn_var"] + 1e-5)
    x = x * params["bn_g"] + params["bn_b"]
    # Dropout(p=0.1) is identity at eval time.
    return x @ params["cls_w"] + params["cls_b"]


# ---------------------------------------------------------------------------
# Parameter construction (deterministic, synthetic) and full forward.
# ---------------------------------------------------------------------------
def init_params(key, vocab_size, max_len, hidden, class_num, pad_id):
    ks = jax.random.split(key, 12)
    s, H = 0.02, hidden
    wte = s * jax.random.normal(ks[0], (vocab_size, H), jnp.float32)
    wte = wte.at[pad_id].set(0.0)         # padding_idx behaviour of wte
    wq = s * jax.random.normal(ks[2], (H, H), jnp.float32)
    wk = s * jax.random.normal(ks[3], (H, H), jnp.float32)
    wv = s * jax.random.normal(ks[4], (H, H), jnp.float32)
    # attention 1/sqrt(H) scale folded into the q projection (zero runtime cost)
    wq = wq * (1.0 / (H ** 0.5))
    params = {
        "wte": wte,
        "wpe": s * jax.random.normal(ks[1], (max_len, H), jnp.float32),
        # fused QKV weight (bf16 matmul operand, f32 accumulation in-kernel)
        "wqkv": jnp.concatenate([wq, wk, wv], axis=1).astype(jnp.bfloat16),
        "wo": (s * jax.random.normal(ks[5], (H, H), jnp.float32)).astype(jnp.bfloat16),
        "w1": (s * jax.random.normal(ks[6], (H, 4 * H), jnp.float32)).astype(jnp.bfloat16),
        "b1": jnp.zeros((1, 4 * H), jnp.float32),
        "w2": (s * jax.random.normal(ks[7], (4 * H, H), jnp.float32)).astype(jnp.bfloat16),
        "b2": jnp.zeros((1, H), jnp.float32),
        "ln1_g": jnp.ones((1, H), jnp.float32),
        "ln1_b": jnp.zeros((1, H), jnp.float32),
        "ln2_g": jnp.ones((1, H), jnp.float32),
        "ln2_b": jnp.zeros((1, H), jnp.float32),
        "lnf_g": jnp.ones((1, H), jnp.float32),
        "lnf_b": jnp.zeros((1, H), jnp.float32),
        # BatchNorm1d(fcSize=2H) in eval mode (running stats)
        "bn_g": jnp.ones((1, 2 * H), jnp.float32),
        "bn_b": jnp.zeros((1, 2 * H), jnp.float32),
        "bn_mean": 0.01 * jax.random.normal(ks[8], (1, 2 * H), jnp.float32),
        "bn_var": jnp.ones((1, 2 * H), jnp.float32),
        # final Linear(2H -> classNum)
        "cls_w": s * jax.random.normal(ks[9], (2 * H, class_num), jnp.float32),
        "cls_b": jnp.zeros((1, class_num), jnp.float32),
    }
    return params


def build_forward(single_buffer_weights=True):
    @jax.jit
    def forward(params, input_ids, attention_mask):
        """Returns {'y_logit': (B, classNum)}."""
        B, S = input_ids.shape
        # TODO(synk): fuse the embedding gather into the kernel via scalar
        # prefetch of input_ids so the (B,S,H) activation never touches HBM.
        x_emb = jnp.take(params["wte"], input_ids, axis=0) + params["wpe"][:S][None]
        attn_mask = attention_mask.astype(jnp.float32)
        pooled = backbone_pool_forward(
            x_emb, attn_mask, params,
            single_buffer_weights=single_buffer_weights)        # (B, 2, H)
        return {"y_logit": classifier_head(pooled, params)}     # (B, classNum)
    return forward


if __name__ == "__main__":
    # small shapes consistent with the module's forward
    B, S, H = 2, 8, 32
    class_num = 1

    tkn2id = {"[PAD]": 0, "[SOS]": 1, "[EOS]": 2, "[MASK]": 3,
              "C": 4, "N": 5, "O": 6, "c": 7, "=": 8, "(": 9, ")": 10, "1": 11}
    vocab_size = len(tkn2id)
    pad_id = tkn2id["[PAD]"]

    key = jax.random.PRNGKey(0)
    k_par, k_ids = jax.random.split(key)
    params = init_params(k_par, vocab_size, S, H, class_num, pad_id)

    input_ids = jax.random.randint(k_ids, (B, S), 4, vocab_size, dtype=jnp.int32)
    input_ids = input_ids.at[:, 0].set(tkn2id["[SOS]"])
    # second sequence has 2 padded positions at the end
    attention_mask = jnp.ones((B, S), jnp.float32)
    attention_mask = attention_mask.at[1, S - 2:].set(0.0)
    input_ids = jnp.where(attention_mask > 0.5, input_ids, pad_id)

    try:
        fwd = build_forward(single_buffer_weights=True)
        out = fwd(params, input_ids, attention_mask)
        y = jax.block_until_ready(out["y_logit"])
    except Exception:
        # Fallback: this jax build rejects single-buffered (pl.Buffered(1))
        # weight specs; rerun with default double-buffered weights.
        fwd = build_forward(single_buffer_weights=False)
        out = fwd(params, input_ids, attention_mask)
        y = jax.block_until_ready(out["y_logit"])

    assert y.shape == (B, class_num)
    assert bool(jnp.all(jnp.isfinite(y)))
    print("KERNEL_OK")
</pallas_src>

<mosaic_0001>
module attributes {stable_mosaic.version = 11 : i64} {
  func.func @_backbone_pool_kernel(%arg0: i32, %arg1: memref<1x8x32xbf16, #tpu.memory_space<vmem>>, %arg2: memref<1x1x8xf32, #tpu.memory_space<vmem>>, %arg3: memref<32x96xbf16, #tpu.memory_space<vmem>>, %arg4: memref<32x32xbf16, #tpu.memory_space<vmem>>, %arg5: memref<32x128xbf16, #tpu.memory_space<vmem>>, %arg6: memref<1x128xf32, #tpu.memory_space<vmem>>, %arg7: memref<128x32xbf16, #tpu.memory_space<vmem>>, %arg8: memref<1x32xf32, #tpu.memory_space<vmem>>, %arg9: memref<1x32xf32, #tpu.memory_space<vmem>>, %arg10: memref<1x32xf32, #tpu.memory_space<vmem>>, %arg11: memref<1x32xf32, #tpu.memory_space<vmem>>, %arg12: memref<1x32xf32, #tpu.memory_space<vmem>>, %arg13: memref<1x32xf32, #tpu.memory_space<vmem>>, %arg14: memref<1x32xf32, #tpu.memory_space<vmem>>, %arg15: memref<1x2x32xf32, #tpu.memory_space<vmem>>) attributes {dimension_semantics = [#tpu.dimension_semantics<parallel>], iteration_bounds = array<i64: 2>, scalar_prefetch = 0 : i64, scratch_operands = 0 : i64, tpu.core_type = #tpu.core_type<tc>, window_params = [{transform_indices = @transform_0, window_bounds = array<i64: 1, 8, 32>}, {transform_indices = @transform_1, window_bounds = array<i64: 1, 1, 8>}, {pipeline_mode = #tpu.pipeline_mode<synchronous>, transform_indices = @transform_2, window_bounds = array<i64: 32, 96>}, {pipeline_mode = #tpu.pipeline_mode<synchronous>, transform_indices = @transform_3, window_bounds = array<i64: 32, 32>}, {pipeline_mode = #tpu.pipeline_mode<synchronous>, transform_indices = @transform_4, window_bounds = array<i64: 32, 128>}, {pipeline_mode = #tpu.pipeline_mode<synchronous>, transform_indices = @transform_5, window_bounds = array<i64: 1, 128>}, {pipeline_mode = #tpu.pipeline_mode<synchronous>, transform_indices = @transform_6, window_bounds = array<i64: 128, 32>}, {pipeline_mode = #tpu.pipeline_mode<synchronous>, transform_indices = @transform_7, window_bounds = array<i64: 1, 32>}, {pipeline_mode = #tpu.pipeline_mode<synchronous>, transform_indices = @transform_8, window_bounds = array<i64: 1, 32>}, {pipeline_mode = #tpu.pipeline_mode<synchronous>, transform_indices = @transform_9, window_bounds = array<i64: 1, 32>}, {pipeline_mode = #tpu.pipeline_mode<synchronous>, transform_indices = @transform_10, window_bounds = array<i64: 1, 32>}, {pipeline_mode = #tpu.pipeline_mode<synchronous>, transform_indices = @transform_11, window_bounds = array<i64: 1, 32>}, {pipeline_mode = #tpu.pipeline_mode<synchronous>, transform_indices = @transform_12, window_bounds = array<i64: 1, 32>}, {pipeline_mode = #tpu.pipeline_mode<synchronous>, transform_indices = @transform_13, window_bounds = array<i64: 1, 32>}, {transform_indices = @transform_14, window_bounds = array<i64: 1, 2, 32>}]} {
    %c0 = arith.constant 0 : index
    %c0_0 = arith.constant 0 : index
    %c0_1 = arith.constant 0 : index
    %0 = vector.load %arg1[%c0, %c0_0, %c0_1] : memref<1x8x32xbf16, #tpu.memory_space<vmem>>, vector<1x8x32xbf16>
    %1 = arith.extf %0 : vector<1x8x32xbf16> to vector<1x8x32xf32>
    %c0_2 = arith.constant 0 : index
    %c0_3 = arith.constant 0 : index
    %c0_4 = arith.constant 0 : index
    %2 = vector.load %arg2[%c0_2, %c0_3, %c0_4] : memref<1x1x8xf32, #tpu.memory_space<vmem>>, vector<1x1x8xf32>
    %3 = vector.shape_cast %1 : vector<1x8x32xf32> to vector<8x32xf32>
    %cst = arith.constant dense<0.000000e+00> : vector<8xf32>
    %4 = vector.multi_reduction <add>, %3, %cst [1] : vector<8x32xf32> to vector<8xf32>
    %5 = vector.shape_cast %4 : vector<8xf32> to vector<8x1xf32>
    %cst_5 = arith.constant 3.200000e+01 : f32
    %6 = vector.broadcast %cst_5 : f32 to vector<8x1xf32>
    %7 = arith.divf %5, %6 : vector<8x1xf32>
    %8 = vector.broadcast %7 : vector<8x1xf32> to vector<8x32xf32>
    %9 = arith.subf %3, %8 : vector<8x32xf32>
    %10 = arith.mulf %9, %9 : vector<8x32xf32>
    %cst_6 = arith.constant dense<0.000000e+00> : vector<8xf32>
    %11 = vector.multi_reduction <add>, %10, %cst_6 [1] : vector<8x32xf32> to vector<8xf32>
    %12 = vector.shape_cast %11 : vector<8xf32> to vector<8x1xf32>
    %cst_7 = arith.constant 3.200000e+01 : f32
    %13 = vector.broadcast %cst_7 : f32 to vector<8x1xf32>
    %14 = arith.divf %12, %13 : vector<8x1xf32>
    %15 = vector.broadcast %7 : vector<8x1xf32> to vector<8x32xf32>
    %16 = arith.subf %3, %15 : vector<8x32xf32>
    %cst_8 = arith.constant 9.99999974E-6 : f32
    %17 = vector.broadcast %cst_8 : f32 to vector<8x1xf32>
    %18 = arith.addf %14, %17 : vector<8x1xf32>
    %19 = math.rsqrt %18 : vector<8x1xf32>
    %20 = vector.broadcast %19 : vector<8x1xf32> to vector<8x32xf32>
    %21 = arith.mulf %16, %20 : vector<8x32xf32>
    %c0_9 = arith.constant 0 : index
    %c0_10 = arith.constant 0 : index
    %22 = vector.load %arg9[%c0_9, %c0_10] : memref<1x32xf32, #tpu.memory_space<vmem>>, vector<1x32xf32>
    %23 = vector.broadcast %22 : vector<1x32xf32> to vector<8x32xf32>
    %24 = arith.mulf %21, %23 : vector<8x32xf32>
    %c0_11 = arith.constant 0 : index
    %c0_12 = arith.constant 0 : index
    %25 = vector.load %arg10[%c0_11, %c0_12] : memref<1x32xf32, #tpu.memory_space<vmem>>, vector<1x32xf32>
    %26 = vector.broadcast %25 : vector<1x32xf32> to vector<8x32xf32>
    %27 = arith.addf %24, %26 : vector<8x32xf32>
    %28 = arith.truncf %27 : vector<8x32xf32> to vector<8x32xbf16>
    %c0_13 = arith.constant 0 : index
    %c0_14 = arith.constant 0 : index
    %29 = vector.load %arg3[%c0_13, %c0_14] : memref<32x96xbf16, #tpu.memory_space<vmem>>, vector<32x96xbf16>
    %cst_15 = arith.constant dense<0.000000e+00> : vector<8x96xf32>
    %30 = tpu.matmul %28, %29, %cst_15 {dimension_numbers = #tpu.dot_dimension_numbers<[1], [0], [0], [1], [0, 0, 1, 1], [], []>} : vector<8x32xbf16>, vector<32x96xbf16>, vector<8x96xf32> -> vector<8x96xf32>
    %31 = arith.truncf %30 : vector<8x96xf32> to vector<8x96xbf16>
    %32 = vector.extract_strided_slice %31 {offsets = [0, 0], sizes = [8, 32], strides = [1, 1]} : vector<8x96xbf16> to vector<8x32xbf16>
    %33 = vector.shape_cast %32 : vector<8x32xbf16> to vector<1x8x32xbf16>
    %34 = vector.extract_strided_slice %31 {offsets = [0, 32], sizes = [8, 32], strides = [1, 1]} : vector<8x96xbf16> to vector<8x32xbf16>
    %35 = vector.shape_cast %34 : vector<8x32xbf16> to vector<1x8x32xbf16>
    %36 = vector.extract_strided_slice %31 {offsets = [0, 64], sizes = [8, 32], strides = [1, 1]} : vector<8x96xbf16> to vector<8x32xbf16>
    %37 = vector.shape_cast %36 : vector<8x32xbf16> to vector<1x8x32xbf16>
    "tpu.trace_start"() <{level = 10 : i32, message = "bqd,bkd->bqk"}> : () -> ()
    %cst_16 = arith.constant dense<0.000000e+00> : vector<1x8x8xf32>
    %38 = tpu.matmul %33, %35, %cst_16 {dimension_numbers = #tpu.dot_dimension_numbers<[2], [2], [1], [1], [0, 0, 0, 1, 1, 1], [0], [0]>} : vector<1x8x32xbf16>, vector<1x8x32xbf16>, vector<1x8x8xf32> -> vector<1x8x8xf32>
    "tpu.trace_stop"() : () -> ()
    %cst_17 = arith.constant 1.000000e+00 : f32
    %39 = vector.broadcast %cst_17 : f32 to vector<1x1x8xf32>
    %40 = arith.subf %2, %39 : vector<1x1x8xf32>
    %cst_18 = arith.constant 1.000000e+09 : f32
    %41 = vector.broadcast %cst_18 : f32 to vector<1x1x8xf32>
    %42 = arith.mulf %40, %41 : vector<1x1x8xf32>
    %43 = vector.broadcast %42 : vector<1x1x8xf32> to vector<1x8x8xf32>
    %44 = arith.addf %38, %43 : vector<1x8x8xf32>
    %45 = tpu.iota {dimensions = array<i32: 1>} : vector<8x8xi32>
    %46 = tpu.iota {dimensions = array<i32: 0>} : vector<8x8xi32>
    %47 = arith.cmpi sle, %45, %46 : vector<8x8xi32>
    %48 = vector.shape_cast %47 : vector<8x8xi1> to vector<1x8x8xi1>
    %cst_19 = arith.constant -1.000000e+09 : f32
    %49 = vector.broadcast %cst_19 : f32 to vector<1x8x8xf32>
    %50 = arith.select %48, %44, %49 : vector<1x8x8xi1>, vector<1x8x8xf32>
    %cst_20 = arith.constant dense<0xFF800000> : vector<1x8xf32>
    %51 = vector.multi_reduction <maximumf>, %50, %cst_20 [2] : vector<1x8x8xf32> to vector<1x8xf32>
    %52 = vector.shape_cast %51 : vector<1x8xf32> to vector<1x8x1xf32>
    %53 = vector.broadcast %52 : vector<1x8x1xf32> to vector<1x8x8xf32>
    %54 = arith.subf %50, %53 : vector<1x8x8xf32>
    %55 = math.exp %54 : vector<1x8x8xf32>
    %cst_21 = arith.constant dense<0.000000e+00> : vector<1x8xf32>
    %56 = vector.multi_reduction <add>, %55, %cst_21 [2] : vector<1x8x8xf32> to vector<1x8xf32>
    %57 = vector.shape_cast %56 : vector<1x8xf32> to vector<1x8x1xf32>
    %58 = tpu.reciprocal %57 {approx = true} : vector<1x8x1xf32> -> vector<1x8x1xf32>
    %59 = vector.broadcast %58 : vector<1x8x1xf32> to vector<1x8x8xf32>
    %60 = arith.mulf %55, %59 : vector<1x8x8xf32>
    %61 = arith.truncf %60 : vector<1x8x8xf32> to vector<1x8x8xbf16>
    "tpu.trace_start"() <{level = 10 : i32, message = "bqk,bkd->bqd"}> : () -> ()
    %cst_22 = arith.constant dense<0.000000e+00> : vector<1x8x32xf32>
    %62 = tpu.matmul %61, %37, %cst_22 {dimension_numbers = #tpu.dot_dimension_numbers<[2], [1], [1], [2], [0, 0, 0, 1, 1, 2], [0], [0]>} : vector<1x8x8xbf16>, vector<1x8x32xbf16>, vector<1x8x32xf32> -> vector<1x8x32xf32>
    "tpu.trace_stop"() : () -> ()
    %63 = vector.shape_cast %62 : vector<1x8x32xf32> to vector<8x32xf32>
    %64 = arith.truncf %63 : vector<8x32xf32> to vector<8x32xbf16>
    %c0_23 = arith.constant 0 : index
    %c0_24 = arith.constant 0 : index
    %65 = vector.load %arg4[%c0_23, %c0_24] : memref<32x32xbf16, #tpu.memory_space<vmem>>, vector<32x32xbf16>
    %cst_25 = arith.constant dense<0.000000e+00> : vector<8x32xf32>
    %66 = tpu.matmul %64, %65, %cst_25 {dimension_numbers = #tpu.dot_dimension_numbers<[1], [0], [0], [1], [0, 0, 1, 1], [], []>} : vector<8x32xbf16>, vector<32x32xbf16>, vector<8x32xf32> -> vector<8x32xf32>
    %67 = arith.addf %3, %66 : vector<8x32xf32>
    %cst_26 = arith.constant dense<0.000000e+00> : vector<8xf32>
    %68 = vector.multi_reduction <add>, %67, %cst_26 [1] : vector<8x32xf32> to vector<8xf32>
    %69 = vector.shape_cast %68 : vector<8xf32> to vector<8x1xf32>
    %cst_27 = arith.constant 3.200000e+01 : f32
    %70 = vector.broadcast %cst_27 : f32 to vector<8x1xf32>
    %71 = arith.divf %69, %70 : vector<8x1xf32>
    %72 = vector.broadcast %71 : vector<8x1xf32> to vector<8x32xf32>
    %73 = arith.subf %67, %72 : vector<8x32xf32>
    %74 = arith.mulf %73, %73 : vector<8x32xf32>
    %cst_28 = arith.constant dense<0.000000e+00> : vector<8xf32>
    %75 = vector.multi_reduction <add>, %74, %cst_28 [1] : vector<8x32xf32> to vector<8xf32>
    %76 = vector.shape_cast %75 : vector<8xf32> to vector<8x1xf32>
    %cst_29 = arith.constant 3.200000e+01 : f32
    %77 = vector.broadcast %cst_29 : f32 to vector<8x1xf32>
    %78 = arith.divf %76, %77 : vector<8x1xf32>
    %79 = vector.broadcast %71 : vector<8x1xf32> to vector<8x32xf32>
    %80 = arith.subf %67, %79 : vector<8x32xf32>
    %cst_30 = arith.constant 9.99999974E-6 : f32
    %81 = vector.broadcast %cst_30 : f32 to vector<8x1xf32>
    %82 = arith.addf %78, %81 : vector<8x1xf32>
    %83 = math.rsqrt %82 : vector<8x1xf32>
    %84 = vector.broadcast %83 : vector<8x1xf32> to vector<8x32xf32>
    %85 = arith.mulf %80, %84 : vector<8x32xf32>
    %c0_31 = arith.constant 0 : index
    %c0_32 = arith.constant 0 : index
    %86 = vector.load %arg11[%c0_31, %c0_32] : memref<1x32xf32, #tpu.memory_space<vmem>>, vector<1x32xf32>
    %87 = vector.broadcast %86 : vector<1x32xf32> to vector<8x32xf32>
    %88 = arith.mulf %85, %87 : vector<8x32xf32>
    %c0_33 = arith.constant 0 : index
    %c0_34 = arith.constant 0 : index
    %89 = vector.load %arg12[%c0_33, %c0_34] : memref<1x32xf32, #tpu.memory_space<vmem>>, vector<1x32xf32>
    %90 = vector.broadcast %89 : vector<1x32xf32> to vector<8x32xf32>
    %91 = arith.addf %88, %90 : vector<8x32xf32>
    %92 = arith.truncf %91 : vector<8x32xf32> to vector<8x32xbf16>
    %c0_35 = arith.constant 0 : index
    %c0_36 = arith.constant 0 : index
    %93 = vector.load %arg5[%c0_35, %c0_36] : memref<32x128xbf16, #tpu.memory_space<vmem>>, vector<32x128xbf16>
    %cst_37 = arith.constant dense<0.000000e+00> : vector<8x128xf32>
    %94 = tpu.matmul %92, %93, %cst_37 {dimension_numbers = #tpu.dot_dimension_numbers<[1], [0], [0], [1], [0, 0, 1, 1], [], []>} : vector<8x32xbf16>, vector<32x128xbf16>, vector<8x128xf32> -> vector<8x128xf32>
    %c0_38 = arith.constant 0 : index
    %c0_39 = arith.constant 0 : index
    %95 = vector.load %arg6[%c0_38, %c0_39] : memref<1x128xf32, #tpu.memory_space<vmem>>, vector<1x128xf32>
    %96 = vector.broadcast %95 : vector<1x128xf32> to vector<8x128xf32>
    %97 = arith.addf %94, %96 : vector<8x128xf32>
    %98 = arith.mulf %97, %97 : vector<8x128xf32>
    %99 = arith.mulf %97, %98 : vector<8x128xf32>
    %cst_40 = arith.constant 4.471500e-02 : f32
    %100 = vector.broadcast %cst_40 : f32 to vector<8x128xf32>
    %101 = arith.mulf %100, %99 : vector<8x128xf32>
    %102 = arith.addf %97, %101 : vector<8x128xf32>
    %cst_41 = arith.constant 0.797884583 : f32
    %103 = vector.broadcast %cst_41 : f32 to vector<8x128xf32>
    %104 = arith.mulf %103, %102 : vector<8x128xf32>
    %105 = math.tanh %104 : vector<8x128xf32>
    %cst_42 = arith.constant 1.000000e+00 : f32
    %106 = vector.broadcast %cst_42 : f32 to vector<8x128xf32>
    %107 = arith.addf %106, %105 : vector<8x128xf32>
    %cst_43 = arith.constant 5.000000e-01 : f32
    %108 = vector.broadcast %cst_43 : f32 to vector<8x128xf32>
    %109 = arith.mulf %108, %107 : vector<8x128xf32>
    %110 = arith.mulf %97, %109 : vector<8x128xf32>
    %111 = arith.truncf %110 : vector<8x128xf32> to vector<8x128xbf16>
    %c0_44 = arith.constant 0 : index
    %c0_45 = arith.constant 0 : index
    %112 = vector.load %arg7[%c0_44, %c0_45] : memref<128x32xbf16, #tpu.memory_space<vmem>>, vector<128x32xbf16>
    %cst_46 = arith.constant dense<0.000000e+00> : vector<8x32xf32>
    %113 = tpu.matmul %111, %112, %cst_46 {dimension_numbers = #tpu.dot_dimension_numbers<[1], [0], [0], [1], [0, 0, 1, 1], [], []>} : vector<8x128xbf16>, vector<128x32xbf16>, vector<8x32xf32> -> vector<8x32xf32>
    %c0_47 = arith.constant 0 : index
    %c0_48 = arith.constant 0 : index
    %114 = vector.load %arg8[%c0_47, %c0_48] : memref<1x32xf32, #tpu.memory_space<vmem>>, vector<1x32xf32>
    %115 = vector.broadcast %114 : vector<1x32xf32> to vector<8x32xf32>
    %116 = arith.addf %113, %115 : vector<8x32xf32>
    %117 = arith.addf %67, %116 : vector<8x32xf32>
    %cst_49 = arith.constant dense<0.000000e+00> : vector<8xf32>
    %118 = vector.multi_reduction <add>, %117, %cst_49 [1] : vector<8x32xf32> to vector<8xf32>
    %119 = vector.shape_cast %118 : vector<8xf32> to vector<8x1xf32>
    %cst_50 = arith.constant 3.200000e+01 : f32
    %120 = vector.broadcast %cst_50 : f32 to vector<8x1xf32>
    %121 = arith.divf %119, %120 : vector<8x1xf32>
    %122 = vector.broadcast %121 : vector<8x1xf32> to vector<8x32xf32>
    %123 = arith.subf %117, %122 : vector<8x32xf32>
    %124 = arith.mulf %123, %123 : vector<8x32xf32>
    %cst_51 = arith.constant dense<0.000000e+00> : vector<8xf32>
    %125 = vector.multi_reduction <add>, %124, %cst_51 [1] : vector<8x32xf32> to vector<8xf32>
    %126 = vector.shape_cast %125 : vector<8xf32> to vector<8x1xf32>
    %cst_52 = arith.constant 3.200000e+01 : f32
    %127 = vector.broadcast %cst_52 : f32 to vector<8x1xf32>
    %128 = arith.divf %126, %127 : vector<8x1xf32>
    %129 = vector.broadcast %121 : vector<8x1xf32> to vector<8x32xf32>
    %130 = arith.subf %117, %129 : vector<8x32xf32>
    %cst_53 = arith.constant 9.99999974E-6 : f32
    %131 = vector.broadcast %cst_53 : f32 to vector<8x1xf32>
    %132 = arith.addf %128, %131 : vector<8x1xf32>
    %133 = math.rsqrt %132 : vector<8x1xf32>
    %134 = vector.broadcast %133 : vector<8x1xf32> to vector<8x32xf32>
    %135 = arith.mulf %130, %134 : vector<8x32xf32>
    %c0_54 = arith.constant 0 : index
    %c0_55 = arith.constant 0 : index
    %136 = vector.load %arg13[%c0_54, %c0_55] : memref<1x32xf32, #tpu.memory_space<vmem>>, vector<1x32xf32>
    %137 = vector.broadcast %136 : vector<1x32xf32> to vector<8x32xf32>
    %138 = arith.mulf %135, %137 : vector<8x32xf32>
    %c0_56 = arith.constant 0 : index
    %c0_57 = arith.constant 0 : index
    %139 = vector.load %arg14[%c0_56, %c0_57] : memref<1x32xf32, #tpu.memory_space<vmem>>, vector<1x32xf32>
    %140 = vector.broadcast %139 : vector<1x32xf32> to vector<8x32xf32>
    %141 = arith.addf %138, %140 : vector<8x32xf32>
    %142 = vector.shape_cast %141 : vector<8x32xf32> to vector<1x8x32xf32>
    %143 = vector.shape_cast %2 : vector<1x1x8xf32> to vector<1x8xf32>
    %cst_58 = arith.constant dense<0xFF800000> : vector<1x32xf32>
    %144 = vector.multi_reduction <maximumf>, %142, %cst_58 [1] : vector<1x8x32xf32> to vector<1x32xf32>
    %cst_59 = arith.constant dense<0.000000e+00> : vector<1xf32>
    %145 = vector.multi_reduction <add>, %143, %cst_59 [1] : vector<1x8xf32> to vector<1xf32>
    %146 = vector.shape_cast %145 : vector<1xf32> to vector<1x1xf32>
    %cst_60 = arith.constant 1.000000e+00 : f32
    %147 = vector.broadcast %cst_60 : f32 to vector<1x1xf32>
    %148 = arith.maximumf %146, %147 : vector<1x1xf32>
    %149 = vector.shape_cast %143 : vector<1x8xf32> to vector<1x8x1xf32>
    %150 = vector.broadcast %149 : vector<1x8x1xf32> to vector<1x8x32xf32>
    %151 = arith.mulf %142, %150 : vector<1x8x32xf32>
    %cst_61 = arith.constant dense<0.000000e+00> : vector<1x32xf32>
    %152 = vector.multi_reduction <add>, %151, %cst_61 [1] : vector<1x8x32xf32> to vector<1x32xf32>
    %153 = tpu.reciprocal %148 {approx = true} : vector<1x1xf32> -> vector<1x1xf32>
    %154 = vector.broadcast %153 : vector<1x1xf32> to vector<1x32xf32>
    %155 = arith.mulf %152, %154 : vector<1x32xf32>
    %c0_62 = arith.constant 0 : index
    %c0_63 = arith.constant 0 : index
    %c0_64 = arith.constant 0 : index
    %156 = vector.load %arg15[%c0_62, %c0_63, %c0_64] : memref<1x2x32xf32, #tpu.memory_space<vmem>>, vector<1x1x32xf32>
    %157 = vector.shape_cast %156 : vector<1x1x32xf32> to vector<1x32xf32>
    %158 = vector.shape_cast %144 : vector<1x32xf32> to vector<1x1x32xf32>
    tpu.vector_store %arg15[%c0_62, %c0_63, %c0_64], %158 {strides = array<i32>} : memref<1x2x32xf32, #tpu.memory_space<vmem>>, vector<1x1x32xf32>,
    %c0_65 = arith.constant 0 : index
    %c1 = arith.constant 1 : index
    %c0_66 = arith.constant 0 : index
    %159 = vector.load %arg15[%c0_65, %c1, %c0_66] : memref<1x2x32xf32, #tpu.memory_space<vmem>>, vector<1x1x32xf32>
    %160 = vector.shape_cast %159 : vector<1x1x32xf32> to vector<1x32xf32>
    %161 = vector.shape_cast %155 : vector<1x32xf32> to vector<1x1x32xf32>
    tpu.vector_store %arg15[%c0_65, %c1, %c0_66], %161 {strides = array<i32>} : memref<1x2x32xf32, #tpu.memory_space<vmem>>, vector<1x1x32xf32>,
    return
  }
  func.func @transform_0(%arg0: i32) -> (i32, i32, i32) {
    %c0_i32 = arith.constant 0 : i32
    %c0_i32_0 = arith.constant 0 : i32
    %c0_i32_1 = arith.constant 0 : i32
    return %arg0, %c0_i32, %c0_i32_0 : i32, i32, i32
  }
  func.func @transform_1(%arg0: i32) -> (i32, i32, i32) {
    %c0_i32 = arith.constant 0 : i32
    %c0_i32_0 = arith.constant 0 : i32
    %c0_i32_1 = arith.constant 0 : i32
    return %arg0, %c0_i32, %c0_i32_0 : i32, i32, i32
  }
  func.func @transform_2(%arg0: i32) -> (i32, i32) {
    %c0_i32 = arith.constant 0 : i32
    %c0_i32_0 = arith.constant 0 : i32
    %c0_i32_1 = arith.constant 0 : i32
    return %c0_i32, %c0_i32_0 : i32, i32
  }
  func.func @transform_3(%arg0: i32) -> (i32, i32) {
    %c0_i32 = arith.constant 0 : i32
    %c0_i32_0 = arith.constant 0 : i32
    %c0_i32_1 = arith.constant 0 : i32
    return %c0_i32, %c0_i32_0 : i32, i32
  }
  func.func @transform_4(%arg0: i32) -> (i32, i32) {
    %c0_i32 = arith.constant 0 : i32
    %c0_i32_0 = arith.constant 0 : i32
    %c0_i32_1 = arith.constant 0 : i32
    return %c0_i32, %c0_i32_0 : i32, i32
  }
  func.func @transform_5(%arg0: i32) -> (i32, i32) {
    %c0_i32 = arith.constant 0 : i32
    %c0_i32_0 = arith.constant 0 : i32
    %c0_i32_1 = arith.constant 0 : i32
    return %c0_i32, %c0_i32_0 : i32, i32
  }
  func.func @transform_6(%arg0: i32) -> (i32, i32) {
    %c0_i32 = arith.constant 0 : i32
    %c0_i32_0 = arith.constant 0 : i32
    %c0_i32_1 = arith.constant 0 : i32
    return %c0_i32, %c0_i32_0 : i32, i32
  }
  func.func @transform_7(%arg0: i32) -> (i32, i32) {
    %c0_i32 = arith.constant 0 : i32
    %c0_i32_0 = arith.constant 0 : i32
    %c0_i32_1 = arith.constant 0 : i32
    return %c0_i32, %c0_i32_0 : i32, i32
  }
  func.func @transform_8(%arg0: i32) -> (i32, i32) {
    %c0_i32 = arith.constant 0 : i32
    %c0_i32_0 = arith.constant 0 : i32
    %c0_i32_1 = arith.constant 0 : i32
    return %c0_i32, %c0_i32_0 : i32, i32
  }
  func.func @transform_9(%arg0: i32) -> (i32, i32) {
    %c0_i32 = arith.constant 0 : i32
    %c0_i32_0 = arith.constant 0 : i32
    %c0_i32_1 = arith.constant 0 : i32
    return %c0_i32, %c0_i32_0 : i32, i32
  }
  func.func @transform_10(%arg0: i32) -> (i32, i32) {
    %c0_i32 = arith.constant 0 : i32
    %c0_i32_0 = arith.constant 0 : i32
    %c0_i32_1 = arith.constant 0 : i32
    return %c0_i32, %c0_i32_0 : i32, i32
  }
  func.func @transform_11(%arg0: i32) -> (i32, i32) {
    %c0_i32 = arith.constant 0 : i32
    %c0_i32_0 = arith.constant 0 : i32
    %c0_i32_1 = arith.constant 0 : i32
    return %c0_i32, %c0_i32_0 : i32, i32
  }
  func.func @transform_12(%arg0: i32) -> (i32, i32) {
    %c0_i32 = arith.constant 0 : i32
    %c0_i32_0 = arith.constant 0 : i32
    %c0_i32_1 = arith.constant 0 : i32
    return %c0_i32, %c0_i32_0 : i32, i32
  }
  func.func @transform_13(%arg0: i32) -> (i32, i32) {
    %c0_i32 = arith.constant 0 : i32
    %c0_i32_0 = arith.constant 0 : i32
    %c0_i32_1 = arith.constant 0 : i32
    return %c0_i32, %c0_i32_0 : i32, i32
  }
  func.func @transform_14(%arg0: i32) -> (i32, i32, i32) {
    %c0_i32 = arith.constant 0 : i32
    %c0_i32_0 = arith.constant 0 : i32
    %c0_i32_1 = arith.constant 0 : i32
    return %arg0, %c0_i32, %c0_i32_0 : i32, i32, i32
  }
}

module attributes {stable_mosaic.version = 11 : i64} {
  func.func @_backbone_pool_kernel(%arg0: i32, %arg1: memref<1x8x32xbf16, #tpu.memory_space<vmem>>, %arg2: memref<1x1x8xf32, #tpu.memory_space<vmem>>, %arg3: memref<32x96xbf16, #tpu.memory_space<vmem>>, %arg4: memref<32x32xbf16, #tpu.memory_space<vmem>>, %arg5: memref<32x128xbf16, #tpu.memory_space<vmem>>, %arg6: memref<1x128xf32, #tpu.memory_space<vmem>>, %arg7: memref<128x32xbf16, #tpu.memory_space<vmem>>, %arg8: memref<1x32xf32, #tpu.memory_space<vmem>>, %arg9: memref<1x32xf32, #tpu.memory_space<vmem>>, %arg10: memref<1x32xf32, #tpu.memory_space<vmem>>, %arg11: memref<1x32xf32, #tpu.memory_space<vmem>>, %arg12: memref<1x32xf32, #tpu.memory_space<vmem>>, %arg13: memref<1x32xf32, #tpu.memory_space<vmem>>, %arg14: memref<1x32xf32, #tpu.memory_space<vmem>>, %arg15: memref<1x2x32xf32, #tpu.memory_space<vmem>>) attributes {dimension_semantics = [#tpu.dimension_semantics<parallel>], iteration_bounds = array<i64: 2>, scalar_prefetch = 0 : i64, scratch_operands = 0 : i64, tpu.core_type = #tpu.core_type<tc>, window_params = [{transform_indices = @transform_0, window_bounds = array<i64: 1, 8, 32>}, {transform_indices = @transform_1, window_bounds = array<i64: 1, 1, 8>}, {pipeline_mode = #tpu.pipeline_mode<synchronous>, transform_indices = @transform_2, window_bounds = array<i64: 32, 96>}, {pipeline_mode = #tpu.pipeline_mode<synchronous>, transform_indices = @transform_3, window_bounds = array<i64: 32, 32>}, {pipeline_mode = #tpu.pipeline_mode<synchronous>, transform_indices = @transform_4, window_bounds = array<i64: 32, 128>}, {pipeline_mode = #tpu.pipeline_mode<synchronous>, transform_indices = @transform_5, window_bounds = array<i64: 1, 128>}, {pipeline_mode = #tpu.pipeline_mode<synchronous>, transform_indices = @transform_6, window_bounds = array<i64: 128, 32>}, {pipeline_mode = #tpu.pipeline_mode<synchronous>, transform_indices = @transform_7, window_bounds = array<i64: 1, 32>}, {pipeline_mode = #tpu.pipeline_mode<synchronous>, transform_indices = @transform_8, window_bounds = array<i64: 1, 32>}, {pipeline_mode = #tpu.pipeline_mode<synchronous>, transform_indices = @transform_9, window_bounds = array<i64: 1, 32>}, {pipeline_mode = #tpu.pipeline_mode<synchronous>, transform_indices = @transform_10, window_bounds = array<i64: 1, 32>}, {pipeline_mode = #tpu.pipeline_mode<synchronous>, transform_indices = @transform_11, window_bounds = array<i64: 1, 32>}, {pipeline_mode = #tpu.pipeline_mode<synchronous>, transform_indices = @transform_12, window_bounds = array<i64: 1, 32>}, {pipeline_mode = #tpu.pipeline_mode<synchronous>, transform_indices = @transform_13, window_bounds = array<i64: 1, 32>}, {transform_indices = @transform_14, window_bounds = array<i64: 1, 2, 32>}]} {
    %c0 = arith.constant 0 : index
    %c0_0 = arith.constant 0 : index
    %c0_1 = arith.constant 0 : index
    %0 = vector.load %arg1[%c0, %c0_0, %c0_1] : memref<1x8x32xbf16, #tpu.memory_space<vmem>>, vector<1x8x32xbf16>
    %1 = arith.extf %0 : vector<1x8x32xbf16> to vector<1x8x32xf32>
    %c0_2 = arith.constant 0 : index
    %c0_3 = arith.constant 0 : index
    %c0_4 = arith.constant 0 : index
    %2 = vector.load %arg2[%c0_2, %c0_3, %c0_4] : memref<1x1x8xf32, #tpu.memory_space<vmem>>, vector<1x1x8xf32>
    %3 = vector.shape_cast %1 : vector<1x8x32xf32> to vector<8x32xf32>
    %cst = arith.constant dense<0.000000e+00> : vector<8xf32>
    %4 = vector.multi_reduction <add>, %3, %cst [1] : vector<8x32xf32> to vector<8xf32>
    %5 = vector.shape_cast %4 : vector<8xf32> to vector<8x1xf32>
    %cst_5 = arith.constant 3.200000e+01 : f32
    %6 = vector.broadcast %cst_5 : f32 to vector<8x1xf32>
    %7 = arith.divf %5, %6 : vector<8x1xf32>
    %8 = vector.broadcast %7 : vector<8x1xf32> to vector<8x32xf32>
    %9 = arith.subf %3, %8 : vector<8x32xf32>
    %10 = arith.mulf %9, %9 : vector<8x32xf32>
    %cst_6 = arith.constant dense<0.000000e+00> : vector<8xf32>
    %11 = vector.multi_reduction <add>, %10, %cst_6 [1] : vector<8x32xf32> to vector<8xf32>
    %12 = vector.shape_cast %11 : vector<8xf32> to vector<8x1xf32>
    %cst_7 = arith.constant 3.200000e+01 : f32
    %13 = vector.broadcast %cst_7 : f32 to vector<8x1xf32>
    %14 = arith.divf %12, %13 : vector<8x1xf32>
    %15 = vector.broadcast %7 : vector<8x1xf32> to vector<8x32xf32>
    %16 = arith.subf %3, %15 : vector<8x32xf32>
    %cst_8 = arith.constant 9.99999974E-6 : f32
    %17 = vector.broadcast %cst_8 : f32 to vector<8x1xf32>
    %18 = arith.addf %14, %17 : vector<8x1xf32>
    %19 = math.rsqrt %18 : vector<8x1xf32>
    %20 = vector.broadcast %19 : vector<8x1xf32> to vector<8x32xf32>
    %21 = arith.mulf %16, %20 : vector<8x32xf32>
    %c0_9 = arith.constant 0 : index
    %c0_10 = arith.constant 0 : index
    %22 = vector.load %arg9[%c0_9, %c0_10] : memref<1x32xf32, #tpu.memory_space<vmem>>, vector<1x32xf32>
    %23 = vector.broadcast %22 : vector<1x32xf32> to vector<8x32xf32>
    %24 = arith.mulf %21, %23 : vector<8x32xf32>
    %c0_11 = arith.constant 0 : index
    %c0_12 = arith.constant 0 : index
    %25 = vector.load %arg10[%c0_11, %c0_12] : memref<1x32xf32, #tpu.memory_space<vmem>>, vector<1x32xf32>
    %26 = vector.broadcast %25 : vector<1x32xf32> to vector<8x32xf32>
    %27 = arith.addf %24, %26 : vector<8x32xf32>
    %28 = arith.truncf %27 : vector<8x32xf32> to vector<8x32xbf16>
    %c0_13 = arith.constant 0 : index
    %c0_14 = arith.constant 0 : index
    %29 = vector.load %arg3[%c0_13, %c0_14] : memref<32x96xbf16, #tpu.memory_space<vmem>>, vector<32x96xbf16>
    %cst_15 = arith.constant dense<0.000000e+00> : vector<8x96xf32>
    %30 = tpu.matmul %28, %29, %cst_15 {dimension_numbers = #tpu.dot_dimension_numbers<[1], [0], [0], [1], [0, 0, 1, 1], [], []>} : vector<8x32xbf16>, vector<32x96xbf16>, vector<8x96xf32> -> vector<8x96xf32>
    %31 = arith.truncf %30 : vector<8x96xf32> to vector<8x96xbf16>
    %32 = vector.extract_strided_slice %31 {offsets = [0, 0], sizes = [8, 32], strides = [1, 1]} : vector<8x96xbf16> to vector<8x32xbf16>
    %33 = vector.shape_cast %32 : vector<8x32xbf16> to vector<1x8x32xbf16>
    %34 = vector.extract_strided_slice %31 {offsets = [0, 32], sizes = [8, 32], strides = [1, 1]} : vector<8x96xbf16> to vector<8x32xbf16>
    %35 = vector.shape_cast %34 : vector<8x32xbf16> to vector<1x8x32xbf16>
    %36 = vector.extract_strided_slice %31 {offsets = [0, 64], sizes = [8, 32], strides = [1, 1]} : vector<8x96xbf16> to vector<8x32xbf16>
    %37 = vector.shape_cast %36 : vector<8x32xbf16> to vector<1x8x32xbf16>
    "tpu.trace_start"() <{level = 10 : i32, message = "bqd,bkd->bqk"}> : () -> ()
    %cst_16 = arith.constant dense<0.000000e+00> : vector<1x8x8xf32>
    %38 = tpu.matmul %33, %35, %cst_16 {dimension_numbers = #tpu.dot_dimension_numbers<[2], [2], [1], [1], [0, 0, 0, 1, 1, 1], [0], [0]>} : vector<1x8x32xbf16>, vector<1x8x32xbf16>, vector<1x8x8xf32> -> vector<1x8x8xf32>
    "tpu.trace_stop"() : () -> ()
    %cst_17 = arith.constant 1.000000e+00 : f32
    %39 = vector.broadcast %cst_17 : f32 to vector<1x1x8xf32>
    %40 = arith.subf %2, %39 : vector<1x1x8xf32>
    %cst_18 = arith.constant 1.000000e+09 : f32
    %41 = vector.broadcast %cst_18 : f32 to vector<1x1x8xf32>
    %42 = arith.mulf %40, %41 : vector<1x1x8xf32>
    %43 = vector.broadcast %42 : vector<1x1x8xf32> to vector<1x8x8xf32>
    %44 = arith.addf %38, %43 : vector<1x8x8xf32>
    %45 = tpu.iota {dimensions = array<i32: 1>} : vector<8x8xi32>
    %46 = tpu.iota {dimensions = array<i32: 0>} : vector<8x8xi32>
    %47 = arith.cmpi sle, %45, %46 : vector<8x8xi32>
    %48 = vector.shape_cast %47 : vector<8x8xi1> to vector<1x8x8xi1>
    %cst_19 = arith.constant -1.000000e+09 : f32
    %49 = vector.broadcast %cst_19 : f32 to vector<1x8x8xf32>
    %50 = arith.select %48, %44, %49 : vector<1x8x8xi1>, vector<1x8x8xf32>
    %cst_20 = arith.constant dense<0xFF800000> : vector<1x8xf32>
    %51 = vector.multi_reduction <maximumf>, %50, %cst_20 [2] : vector<1x8x8xf32> to vector<1x8xf32>
    %52 = vector.shape_cast %51 : vector<1x8xf32> to vector<1x8x1xf32>
    %53 = vector.broadcast %52 : vector<1x8x1xf32> to vector<1x8x8xf32>
    %54 = arith.subf %50, %53 : vector<1x8x8xf32>
    %55 = math.exp %54 : vector<1x8x8xf32>
    %cst_21 = arith.constant dense<0.000000e+00> : vector<1x8xf32>
    %56 = vector.multi_reduction <add>, %55, %cst_21 [2] : vector<1x8x8xf32> to vector<1x8xf32>
    %57 = vector.shape_cast %56 : vector<1x8xf32> to vector<1x8x1xf32>
    %58 = tpu.reciprocal %57 {approx = true} : vector<1x8x1xf32> -> vector<1x8x1xf32>
    %59 = vector.broadcast %58 : vector<1x8x1xf32> to vector<1x8x8xf32>
    %60 = arith.mulf %55, %59 : vector<1x8x8xf32>
    %61 = arith.truncf %60 : vector<1x8x8xf32> to vector<1x8x8xbf16>
    "tpu.trace_start"() <{level = 10 : i32, message = "bqk,bkd->bqd"}> : () -> ()
    %cst_22 = arith.constant dense<0.000000e+00> : vector<1x8x32xf32>
    %62 = tpu.matmul %61, %37, %cst_22 {dimension_numbers = #tpu.dot_dimension_numbers<[2], [1], [1], [2], [0, 0, 0, 1, 1, 2], [0], [0]>} : vector<1x8x8xbf16>, vector<1x8x32xbf16>, vector<1x8x32xf32> -> vector<1x8x32xf32>
    "tpu.trace_stop"() : () -> ()
    %63 = vector.shape_cast %62 : vector<1x8x32xf32> to vector<8x32xf32>
    %64 = arith.truncf %63 : vector<8x32xf32> to vector<8x32xbf16>
    %c0_23 = arith.constant 0 : index
    %c0_24 = arith.constant 0 : index
    %65 = vector.load %arg4[%c0_23, %c0_24] : memref<32x32xbf16, #tpu.memory_space<vmem>>, vector<32x32xbf16>
    %cst_25 = arith.constant dense<0.000000e+00> : vector<8x32xf32>
    %66 = tpu.matmul %64, %65, %cst_25 {dimension_numbers = #tpu.dot_dimension_numbers<[1], [0], [0], [1], [0, 0, 1, 1], [], []>} : vector<8x32xbf16>, vector<32x32xbf16>, vector<8x32xf32> -> vector<8x32xf32>
    %67 = arith.addf %3, %66 : vector<8x32xf32>
    %cst_26 = arith.constant dense<0.000000e+00> : vector<8xf32>
    %68 = vector.multi_reduction <add>, %67, %cst_26 [1] : vector<8x32xf32> to vector<8xf32>
    %69 = vector.shape_cast %68 : vector<8xf32> to vector<8x1xf32>
    %cst_27 = arith.constant 3.200000e+01 : f32
    %70 = vector.broadcast %cst_27 : f32 to vector<8x1xf32>
    %71 = arith.divf %69, %70 : vector<8x1xf32>
    %72 = vector.broadcast %71 : vector<8x1xf32> to vector<8x32xf32>
    %73 = arith.subf %67, %72 : vector<8x32xf32>
    %74 = arith.mulf %73, %73 : vector<8x32xf32>
    %cst_28 = arith.constant dense<0.000000e+00> : vector<8xf32>
    %75 = vector.multi_reduction <add>, %74, %cst_28 [1] : vector<8x32xf32> to vector<8xf32>
    %76 = vector.shape_cast %75 : vector<8xf32> to vector<8x1xf32>
    %cst_29 = arith.constant 3.200000e+01 : f32
    %77 = vector.broadcast %cst_29 : f32 to vector<8x1xf32>
    %78 = arith.divf %76, %77 : vector<8x1xf32>
    %79 = vector.broadcast %71 : vector<8x1xf32> to vector<8x32xf32>
    %80 = arith.subf %67, %79 : vector<8x32xf32>
    %cst_30 = arith.constant 9.99999974E-6 : f32
    %81 = vector.broadcast %cst_30 : f32 to vector<8x1xf32>
    %82 = arith.addf %78, %81 : vector<8x1xf32>
    %83 = math.rsqrt %82 : vector<8x1xf32>
    %84 = vector.broadcast %83 : vector<8x1xf32> to vector<8x32xf32>
    %85 = arith.mulf %80, %84 : vector<8x32xf32>
    %c0_31 = arith.constant 0 : index
    %c0_32 = arith.constant 0 : index
    %86 = vector.load %arg11[%c0_31, %c0_32] : memref<1x32xf32, #tpu.memory_space<vmem>>, vector<1x32xf32>
    %87 = vector.broadcast %86 : vector<1x32xf32> to vector<8x32xf32>
    %88 = arith.mulf %85, %87 : vector<8x32xf32>
    %c0_33 = arith.constant 0 : index
    %c0_34 = arith.constant 0 : index
    %89 = vector.load %arg12[%c0_33, %c0_34] : memref<1x32xf32, #tpu.memory_space<vmem>>, vector<1x32xf32>
    %90 = vector.broadcast %89 : vector<1x32xf32> to vector<8x32xf32>
    %91 = arith.addf %88, %90 : vector<8x32xf32>
    %92 = arith.truncf %91 : vector<8x32xf32> to vector<8x32xbf16>
    %c0_35 = arith.constant 0 : index
    %c0_36 = arith.constant 0 : index
    %93 = vector.load %arg5[%c0_35, %c0_36] : memref<32x128xbf16, #tpu.memory_space<vmem>>, vector<32x128xbf16>
    %cst_37 = arith.constant dense<0.000000e+00> : vector<8x128xf32>
    %94 = tpu.matmul %92, %93, %cst_37 {dimension_numbers = #tpu.dot_dimension_numbers<[1], [0], [0], [1], [0, 0, 1, 1], [], []>} : vector<8x32xbf16>, vector<32x128xbf16>, vector<8x128xf32> -> vector<8x128xf32>
    %c0_38 = arith.constant 0 : index
    %c0_39 = arith.constant 0 : index
    %95 = vector.load %arg6[%c0_38, %c0_39] : memref<1x128xf32, #tpu.memory_space<vmem>>, vector<1x128xf32>
    %96 = vector.broadcast %95 : vector<1x128xf32> to vector<8x128xf32>
    %97 = arith.addf %94, %96 : vector<8x128xf32>
    %98 = arith.mulf %97, %97 : vector<8x128xf32>
    %99 = arith.mulf %97, %98 : vector<8x128xf32>
    %cst_40 = arith.constant 4.471500e-02 : f32
    %100 = vector.broadcast %cst_40 : f32 to vector<8x128xf32>
    %101 = arith.mulf %100, %99 : vector<8x128xf32>
    %102 = arith.addf %97, %101 : vector<8x128xf32>
    %cst_41 = arith.constant 0.797884583 : f32
    %103 = vector.broadcast %cst_41 : f32 to vector<8x128xf32>
    %104 = arith.mulf %103, %102 : vector<8x128xf32>
    %105 = math.tanh %104 : vector<8x128xf32>
    %cst_42 = arith.constant 1.000000e+00 : f32
    %106 = vector.broadcast %cst_42 : f32 to vector<8x128xf32>
    %107 = arith.addf %106, %105 : vector<8x128xf32>
    %cst_43 = arith.constant 5.000000e-01 : f32
    %108 = vector.broadcast %cst_43 : f32 to vector<8x128xf32>
    %109 = arith.mulf %108, %107 : vector<8x128xf32>
    %110 = arith.mulf %97, %109 : vector<8x128xf32>
    %111 = arith.truncf %110 : vector<8x128xf32> to vector<8x128xbf16>
    %c0_44 = arith.constant 0 : index
    %c0_45 = arith.constant 0 : index
    %112 = vector.load %arg7[%c0_44, %c0_45] : memref<128x32xbf16, #tpu.memory_space<vmem>>, vector<128x32xbf16>
    %cst_46 = arith.constant dense<0.000000e+00> : vector<8x32xf32>
    %113 = tpu.matmul %111, %112, %cst_46 {dimension_numbers = #tpu.dot_dimension_numbers<[1], [0], [0], [1], [0, 0, 1, 1], [], []>} : vector<8x128xbf16>, vector<128x32xbf16>, vector<8x32xf32> -> vector<8x32xf32>
    %c0_47 = arith.constant 0 : index
    %c0_48 = arith.constant 0 : index
    %114 = vector.load %arg8[%c0_47, %c0_48] : memref<1x32xf32, #tpu.memory_space<vmem>>, vector<1x32xf32>
    %115 = vector.broadcast %114 : vector<1x32xf32> to vector<8x32xf32>
    %116 = arith.addf %113, %115 : vector<8x32xf32>
    %117 = arith.addf %67, %116 : vector<8x32xf32>
    %cst_49 = arith.constant dense<0.000000e+00> : vector<8xf32>
    %118 = vector.multi_reduction <add>, %117, %cst_49 [1] : vector<8x32xf32> to vector<8xf32>
    %119 = vector.shape_cast %118 : vector<8xf32> to vector<8x1xf32>
    %cst_50 = arith.constant 3.200000e+01 : f32
    %120 = vector.broadcast %cst_50 : f32 to vector<8x1xf32>
    %121 = arith.divf %119, %120 : vector<8x1xf32>
    %122 = vector.broadcast %121 : vector<8x1xf32> to vector<8x32xf32>
    %123 = arith.subf %117, %122 : vector<8x32xf32>
    %124 = arith.mulf %123, %123 : vector<8x32xf32>
    %cst_51 = arith.constant dense<0.000000e+00> : vector<8xf32>
    %125 = vector.multi_reduction <add>, %124, %cst_51 [1] : vector<8x32xf32> to vector<8xf32>
    %126 = vector.shape_cast %125 : vector<8xf32> to vector<8x1xf32>
    %cst_52 = arith.constant 3.200000e+01 : f32
    %127 = vector.broadcast %cst_52 : f32 to vector<8x1xf32>
    %128 = arith.divf %126, %127 : vector<8x1xf32>
    %129 = vector.broadcast %121 : vector<8x1xf32> to vector<8x32xf32>
    %130 = arith.subf %117, %129 : vector<8x32xf32>
    %cst_53 = arith.constant 9.99999974E-6 : f32
    %131 = vector.broadcast %cst_53 : f32 to vector<8x1xf32>
    %132 = arith.addf %128, %131 : vector<8x1xf32>
    %133 = math.rsqrt %132 : vector<8x1xf32>
    %134 = vector.broadcast %133 : vector<8x1xf32> to vector<8x32xf32>
    %135 = arith.mulf %130, %134 : vector<8x32xf32>
    %c0_54 = arith.constant 0 : index
    %c0_55 = arith.constant 0 : index
    %136 = vector.load %arg13[%c0_54, %c0_55] : memref<1x32xf32, #tpu.memory_space<vmem>>, vector<1x32xf32>
    %137 = vector.broadcast %136 : vector<1x32xf32> to vector<8x32xf32>
    %138 = arith.mulf %135, %137 : vector<8x32xf32>
    %c0_56 = arith.constant 0 : index
    %c0_57 = arith.constant 0 : index
    %139 = vector.load %arg14[%c0_56, %c0_57] : memref<1x32xf32, #tpu.memory_space<vmem>>, vector<1x32xf32>
    %140 = vector.broadcast %139 : vector<1x32xf32> to vector<8x32xf32>
    %141 = arith.addf %138, %140 : vector<8x32xf32>
    %142 = vector.shape_cast %141 : vector<8x32xf32> to vector<1x8x32xf32>
    %143 = vector.shape_cast %2 : vector<1x1x8xf32> to vector<1x8xf32>
    %cst_58 = arith.constant dense<0xFF800000> : vector<1x32xf32>
    %144 = vector.multi_reduction <maximumf>, %142, %cst_58 [1] : vector<1x8x32xf32> to vector<1x32xf32>
    %cst_59 = arith.constant dense<0.000000e+00> : vector<1xf32>
    %145 = vector.multi_reduction <add>, %143, %cst_59 [1] : vector<1x8xf32> to vector<1xf32>
    %146 = vector.shape_cast %145 : vector<1xf32> to vector<1x1xf32>
    %cst_60 = arith.constant 1.000000e+00 : f32
    %147 = vector.broadcast %cst_60 : f32 to vector<1x1xf32>
    %148 = arith.maximumf %146, %147 : vector<1x1xf32>
    %149 = vector.shape_cast %143 : vector<1x8xf32> to vector<1x8x1xf32>
    %150 = vector.broadcast %149 : vector<1x8x1xf32> to vector<1x8x32xf32>
    %151 = arith.mulf %142, %150 : vector<1x8x32xf32>
    %cst_61 = arith.constant dense<0.000000e+00> : vector<1x32xf32>
    %152 = vector.multi_reduction <add>, %151, %cst_61 [1] : vector<1x8x32xf32> to vector<1x32xf32>
    %153 = tpu.reciprocal %148 {approx = true} : vector<1x1xf32> -> vector<1x1xf32>
    %154 = vector.broadcast %153 : vector<1x1xf32> to vector<1x32xf32>
    %155 = arith.mulf %152, %154 : vector<1x32xf32>
    %c0_62 = arith.constant 0 : index
    %c0_63 = arith.constant 0 : index
    %c0_64 = arith.constant 0 : index
    %156 = vector.load %arg15[%c0_62, %c0_63, %c0_64] : memref<1x2x32xf32, #tpu.memory_space<vmem>>, vector<1x1x32xf32>
    %157 = vector.shape_cast %156 : vector<1x1x32xf32> to vector<1x32xf32>
    %158 = vector.shape_cast %144 : vector<1x32xf32> to vector<1x1x32xf32>
    tpu.vector_store %arg15[%c0_62, %c0_63, %c0_64], %158 {strides = array<i32>} : memref<1x2x32xf32, #tpu.memory_space<vmem>>, vector<1x1x32xf32>,
    %c0_65 = arith.constant 0 : index
    %c1 = arith.constant 1 : index
    %c0_66 = arith.constant 0 : index
    %159 = vector.load %arg15[%c0_65, %c1, %c0_66] : memref<1x2x32xf32, #tpu.memory_space<vmem>>, vector<1x1x32xf32>
    %160 = vector.shape_cast %159 : vector<1x1x32xf32> to vector<1x32xf32>
    %161 = vector.shape_cast %155 : vector<1x32xf32> to vector<1x1x32xf32>
    tpu.vector_store %arg15[%c0_65, %c1, %c0_66], %161 {strides = array<i32>} : memref<1x2x32xf32, #tpu.memory_space<vmem>>, vector<1x1x32xf32>,
    return
  }
  func.func @transform_0(%arg0: i32) -> (i32, i32, i32) {
    %c0_i32 = arith.constant 0 : i32
    %c0_i32_0 = arith.constant 0 : i32
    %c0_i32_1 = arith.constant 0 : i32
    return %arg0, %c0_i32, %c0_i32_0 : i32, i32, i32
  }
  func.func @transform_1(%arg0: i32) -> (i32, i32, i32) {
    %c0_i32 = arith.constant 0 : i32
    %c0_i32_0 = arith.constant 0 : i32
    %c0_i32_1 = arith.constant 0 : i32
    return %arg0, %c0_i32, %c0_i32_0 : i32, i32, i32
  }
  func.func @transform_2(%arg0: i32) -> (i32, i32) {
    %c0_i32 = arith.constant 0 : i32
    %c0_i32_0 = arith.constant 0 : i32
    %c0_i32_1 = arith.constant 0 : i32
    return %c0_i32, %c0_i32_0 : i32, i32
  }
  func.func @transform_3(%arg0: i32) -> (i32, i32) {
    %c0_i32 = arith.constant 0 : i32
    %c0_i32_0 = arith.constant 0 : i32
    %c0_i32_1 = arith.constant 0 : i32
    return %c0_i32, %c0_i32_0 : i32, i32
  }
  func.func @transform_4(%arg0: i32) -> (i32, i32) {
    %c0_i32 = arith.constant 0 : i32
    %c0_i32_0 = arith.constant 0 : i32
    %c0_i32_1 = arith.constant 0 : i32
    return %c0_i32, %c0_i32_0 : i32, i32
  }
  func.func @transform_5(%arg0: i32) -> (i32, i32) {
    %c0_i32 = arith.constant 0 : i32
    %c0_i32_0 = arith.constant 0 : i32
    %c0_i32_1 = arith.constant 0 : i32
    return %c0_i32, %c0_i32_0 : i32, i32
  }
  func.func @transform_6(%arg0: i32) -> (i32, i32) {
    %c0_i32 = arith.constant 0 : i32
    %c0_i32_0 = arith.constant 0 : i32
    %c0_i32_1 = arith.constant 0 : i32
    return %c0_i32, %c0_i32_0 : i32, i32
  }
  func.func @transform_7(%arg0: i32) -> (i32, i32) {
    %c0_i32 = arith.constant 0 : i32
    %c0_i32_0 = arith.constant 0 : i32
    %c0_i32_1 = arith.constant 0 : i32
    return %c0_i32, %c0_i32_0 : i32, i32
  }
  func.func @transform_8(%arg0: i32) -> (i32, i32) {
    %c0_i32 = arith.constant 0 : i32
    %c0_i32_0 = arith.constant 0 : i32
    %c0_i32_1 = arith.constant 0 : i32
    return %c0_i32, %c0_i32_0 : i32, i32
  }
  func.func @transform_9(%arg0: i32) -> (i32, i32) {
    %c0_i32 = arith.constant 0 : i32
    %c0_i32_0 = arith.constant 0 : i32
    %c0_i32_1 = arith.constant 0 : i32
    return %c0_i32, %c0_i32_0 : i32, i32
  }
  func.func @transform_10(%arg0: i32) -> (i32, i32) {
    %c0_i32 = arith.constant 0 : i32
    %c0_i32_0 = arith.constant 0 : i32
    %c0_i32_1 = arith.constant 0 : i32
    return %c0_i32, %c0_i32_0 : i32, i32
  }
  func.func @transform_11(%arg0: i32) -> (i32, i32) {
    %c0_i32 = arith.constant 0 : i32
    %c0_i32_0 = arith.constant 0 : i32
    %c0_i32_1 = arith.constant 0 : i32
    return %c0_i32, %c0_i32_0 : i32, i32
  }
  func.func @transform_12(%arg0: i32) -> (i32, i32) {
    %c0_i32 = arith.constant 0 : i32
    %c0_i32_0 = arith.constant 0 : i32
    %c0_i32_1 = arith.constant 0 : i32
    return %c0_i32, %c0_i32_0 : i32, i32
  }
  func.func @transform_13(%arg0: i32) -> (i32, i32) {
    %c0_i32 = arith.constant 0 : i32
    %c0_i32_0 = arith.constant 0 : i32
    %c0_i32_1 = arith.constant 0 : i32
    return %c0_i32, %c0_i32_0 : i32, i32
  }
  func.func @transform_14(%arg0: i32) -> (i32, i32, i32) {
    %c0_i32 = arith.constant 0 : i32
    %c0_i32_0 = arith.constant 0 : i32
    %c0_i32_1 = arith.constant 0 : i32
    return %arg0, %c0_i32, %c0_i32_0 : i32, i32, i32
  }
}

</mosaic_0001>

<bundles_post_ra>
// kernel: forward.1
= control target key start
LH: loop header
LB: loop body
LE: loop exit
PB: predicated region body
PF: predicated region fallthrough
CT: control target
= control target key end

     0   :  { %s1342_s29 = smov 0   ;;  %s1500_s0 = inlined_call_operand.vmem [shape: bf16[2,8,32], index: 0, kind: input, shape index: {}]   ;;  %s1501_s1 = inlined_call_operand.vmem [shape: f32[2,1,8], index: 1, kind: input, shape index: {}]   ;;  %s1502_s2 = inlined_call_operand.vmem [shape: bf16[32,96], index: 2, kind: input, shape index: {}]   ;;  %s1503_s3 = inlined_call_operand.vmem [shape: bf16[32,32], index: 3, kind: input, shape index: {}]   ;;  %s1504_s4 = inlined_call_operand.vmem [shape: bf16[32,128], index: 4, kind: input, shape index: {}]   ;;  %s1505_s5 = inlined_call_operand.vmem [shape: f32[1,128], index: 5, kind: input, shape index: {}]   ;;  %s1506_s6 = inlined_call_operand.vmem [shape: bf16[128,32], index: 6, kind: input, shape index: {}]   ;;  %s1507_s7 = inlined_call_operand.vmem [shape: f32[1,32], index: 7, kind: input, shape index: {}]   ;;  %s1508_s8 = inlined_call_operand.vmem [shape: f32[1,32], index: 8, kind: input, shape index: {}]   ;;  %s1509_s9 = inlined_call_operand.vmem [shape: f32[1,32], index: 9, kind: input, shape index: {}]   ;;  %s1510_s10 = inlined_call_operand.vmem [shape: f32[1,32], index: 10, kind: input, shape index: {}]   ;;  %s1511_s11 = inlined_call_operand.vmem [shape: f32[1,32], index: 11, kind: input, shape index: {}]   ;;  %s1512_s12 = inlined_call_operand.vmem [shape: f32[1,32], index: 12, kind: input, shape index: {}]   ;;  %s1513_s13 = inlined_call_operand.vmem [shape: f32[1,32], index: 13, kind: input, shape index: {}]   ;;  %s1514_s14 = inlined_call_operand.vmem [shape: f32[2,2,32], index: 14, kind: output, shape index: {}]  }
   0x1 LB: > { %s1100_s30 = sadd.s32 4294967295, %s1261_s29   ;;  %p1104_p0 = scmp.ge.s32.totalorder %s1261_s29, 1  ;;  %s1261_s29 = sphi %s1342_s29, %s24_s29  }
   0x2   : > { %p419_p1 = scmp.lt.s32.totalorder %s1261_s29, 3 }
   0x4   : > { %p420_p2 = pnand %p1104_p0, %p419_p1 }
   0x5   : > { %p466_p3 = scmp.lt.s32.totalorder (!%p420_p2), %s1100_s30, 1  ;;  %s1265_s27 = smov (!%p420_p2), 96  }
   0x6   : > { %423 = sbr.rel (%p420_p2) target bundleno = 2605 (0xa2d), region = 76  ;;  %s1266_s17 = smov (!%p420_p2), 64  }
   0xb   : > { %s1516_s30 = smov (!%p466_p3, %s1100_s30), 1  ;;  %vm481_vm0 = vcmask 261120   ;;  %v1227_v8 = vld [vmem:[%s1502_s2 + $0x8] sm:$0xff]   ;;  %v1263_v9 = vmov 0.0   ;;  %vm1264_vm1 = vmmov 0   ;;  %v1228_v10 = vld [vmem:[%s1502_s2] sm:$0xff]   ;;  %v576_v28 = vlaneseq }
   0xc   : > { %s1105_s15 = sshll.u32 %s1516_s30, 2  ;;  %1159 = vmatprep.subr.bf16.mxu0 %v1263_v9  ;;  %1163 = vmatprep.mubr.msk.bf16.mxu0 %vm1264_vm1, %v1263_v9  ;;  %v1107_v15 = vld [vmem:[%s1508_s8] ss:$0 sm:$0xff]  ;;  %s472_s16 = scalar_lea.vmem %s1501_s1, %s1516_s30  ;;  %vm636_vm3 = vcmask 64512   ;;  %v1229_v48 = vld [vmem:[%s1503_s3 + $0x8] sm:$0xff]   ;;  %vm654_vm4 = vcmask 1043456  }
   0xd   : > { %s469_s18 = scalar_lea.vmem %s1500_s0, %s1105_s15  ;;  %1160 = vmatpush3.bf16.msra.mxu0 %v1227_v8  ;;  %1179 = vmatprep.subr.bf16.mxu1 %v1263_v9  ;;  %v1108_v17 = vld [vmem:[%s1509_s9] ss:$0 sm:$0xff]  ;;  %v1397_v31 = vshrl.u32 %v576_v28, 7  ;;  %v631_v34 = vand.u32 127, %v576_v28  ;;  %vm1013_vm5 = vcmask 57344   ;;  %s1106_s26 = sshll.u32 %s1516_s30, 1 }
   0xe   : > { %v478_v0 = vld [vmem:[%s469_s18] sm:$0xf]  ;;  %1161 = vmatprep.subr.bf16.mxu0 %v1263_v9  ;;  %1183 = vmatprep.mubr.msk.bf16.mxu1 %vm1264_vm1, %v1263_v9  ;;  %s476_s15 = scalar_lea.vmem %s1514_s14, %s1106_s26  ;;  %vm1035_vm6 = vcmask 253952  }
   0xf   : > { %v1356_v1 = vunpack.c.l.bf16 %v478_v0  ;;  %v1394_v29 = vld [vmem:[%s472_s16] sm:$0x1]  ;;  %v578_v33 = vsub.s32 0, %v1397_v31  ;;  %vm634_vm2 = vcmp.le.s32.totalorder %v631_v34, %v1397_v31  ;;  %1180 = vmatpush3.bf16.msra.mxu1 %v1229_v48 }
  0x10   : > { %v1112_v30 = vadd.f32 -1.0, %v1394_v29  ;;  %1181 = vmatprep.subr.bf16.mxu1 %v1263_v9  ;;  %v1230_v55 = vld [vmem:[%s1503_s3] sm:$0xff]  }
  0x11   : > { %v482_v2 = vsel %vm481_vm0, %v1356_v1, 0.0  ;;  %1162 = vmatpush3.bf16.msra.mxu0 %v1228_v10  ;;  %v1232_v10 = vld [vmem:[%s1504_s4] sm:$0xff]  }
  0x12   : > { %483 = vadd.xlane.f32.xlu0 %v482_v2  ;;  %1167 = vmatprep.subr.bf16.mxu0 %v1263_v9  ;;  %v574_v32 = vmul.f32 1e+09, %v1112_v30  ;;  %v1240_v28 = vld [vmem:[%s1506_s6] sm:$0xff]  }
  0x13   : > { %1182 = vmatpush3.bf16.msra.mxu1 %v1230_v55  ;;  %v1120_v30 = vld [vmem:[%s1505_s5] ss:$0 sm:$0xff]  ;;  %v1014_v55 = vsel %vm1013_vm5, %v1394_v29, 0.0 }
  0x14   : > { %v579_v35 = vrot.slane %v574_v32, %v578_v33  ;;  %1195 = vmatprep.subr.bf16.mxu1 %v1263_v9 }
  0x9b   : > { %v484_v3 = vpop.xlane.xlu0 %483 }
  0x9c   : > { %v486_v4 = vmul.f32 0.03125, %v484_v3 }
  0x9e   : > { %v487_v5 = vsub.f32 %v1356_v1, %v486_v4 }
  0xa0   : > { %v488_v6 = vmul.f32 %v487_v5, %v487_v5 }
  0xa2   : > { %v489_v7 = vsel %vm481_vm0, %v488_v6, 0.0 }
  0xa3   : > { %490 = vadd.xlane.f32.xlu0 %v489_v7 }
 0x12c   : > { %v491_v11 = vpop.xlane.xlu0 %490 }
 0x12d   : > { %v492_v12 = vmul.f32 0.03125, %v491_v11 }
 0x12f   : > { %v493_v13 = vadd.f32 1e-05, %v492_v12 }
 0x131   : > { %1241 = vrsqrt.f32 %v493_v13 }
 0x13e   : > { %v1242_v14 = vpop.eup %1241 }
 0x13f   : > { %v495_v16 = vmul.f32 %v1242_v14, %v487_v5 }
 0x141   : > { %v503_v18 = vmul.f32 %v1107_v15, %v495_v16  ;;  %v1118_v15 = vld [vmem:[%s1510_s10] ss:$0 sm:$0xff] }
 0x143   : > { %v511_v19 = vadd.f32 %v1108_v17, %v503_v18  ;;  %v1119_v17 = vld [vmem:[%s1511_s11] ss:$0 sm:$0xff] }
 0x145   : > { %v512_v20 = vpack.c.bf16 %v511_v19, %v511_v19 }
 0x147   : > { %1164 = vmatmul.mubr.msk.bf16.vlgmr.msra.gmra.mxu0 %vm481_vm0, %v512_v20 }
 0x148   : > { %1169 = vmatprep.mubr.msk.bf16.mxu0 %vm1264_vm1, %v1263_v9 }
 0x207   : > { %v566_v21 = vpop.f32.mrf.mxu0 }
 0x208   : > { %v572_v22 = vpack.c.bf16 %v566_v21, %v566_v21  ;;  %v1233_v21 = vld [vmem:[%s1506_s6 + $0x38] sm:$0xff]  }
 0x209   : > { %v1165_v23 = vpop.f32.mrf.mxu0 }
 0x20a   : > { %582 = vrot.lane.b32.xlu1 %v572_v22, %s1265_s27  ;;  %v1235_v23 = vld [vmem:[%s1506_s6 + $0x28] sm:$0xff]  }
 0x20b   : > { %v569_v24 = vpop.f32.mrf.mxu0 }
 0x20c   : > { %v1236_v24 = vld [vmem:[%s1506_s6 + $0x20] sm:$0xff]  }
 0x20d   : > { %v1166_v25 = vpop.f32.mrf.mxu0 }
 0x20e   : > { %v1237_v25 = vld [vmem:[%s1506_s6 + $0x18] sm:$0xff]  }
 0x27c   : > { %v583_v26 = vpop.permute.xlu1 %582 }
 0x27d   : > { %v588_v27 = vsel %vm481_vm0, %v583_v26, 0  ;;  %v1238_v26 = vld [vmem:[%s1506_s6 + $0x10] sm:$0xff]  }
 0x27e   : > { %1168 = vmatpush3.bf16.xpose.msra.mxu0 %v588_v27  ;;  %v1239_v27 = vld [vmem:[%s1506_s6 + $0x8] sm:$0xff]  }
 0x27f   : > { %1173 = vmatprep.subr.bf16.mxu0 %v1263_v9 }
 0x285   : > { %1170 = vmatmul.mubr.msk.bf16.vlgmr.msra.gmra.mxu0 %vm481_vm0, %v572_v22 }
 0x286   : > { %1175 = vmatprep.mubr.msk.bf16.mxu0 %vm1264_vm1, %v1263_v9 }
 0x345   : > { %v624_v36 = vpop.f32.mrf.mxu0 }
 0x346   : > { %v625_v37 = vadd.f32 %v624_v36, %v579_v35 }
 0x347   : > { %v1171_v38 = vpop.f32.mrf.mxu0 }
 0x348   : > { %v635_v39 = vsel %vm634_vm2, %v625_v37, -1e+09 }
 0x349   : > { %v627_v40 = vpop.f32.mrf.mxu0  ;;  %v637_v41 = vsel %vm636_vm3, %v635_v39, -inf }
 0x34a   : > { %638 = vmax.xlane.f32.xlu1 %v637_v41 }
 0x34b   : > { %v1172_v42 = vpop.f32.mrf.mxu0 }
 0x3d3   : > { %v639_v43 = vpop.xlane.xlu1 %638 }
 0x3d4   : > { %v640_v44 = vsub.f32 %v635_v39, %v639_v43 }
 0x3d6   : > { %v641_v45 = vmul.f32 1.442695, %v640_v44 }
 0x3d8   : > { %1243 = vpow2.f32 %v641_v45 }
 0x3e5   : > { %v1244_v46 = vpop.eup %1243 }
 0x3e6   : > { %v643_v47 = vsel %vm636_vm3, %v1244_v46, 0.0 }
 0x3e7   : > { %644 = vadd.xlane.f32.xlu0 %v643_v47  ;;  %v1124_v47 = vld [vmem:[%s1507_s7] ss:$0 sm:$0xff] }
 0x3fd   : > { %649 = vrot.lane.b32.xlu0 %v572_v22, %s1266_s17  ;;  %v1234_v22 = vld [vmem:[%s1506_s6 + $0x30] sm:$0xff]  }
 0x470   : > { %v645_v49 = vpop.xlane.xlu0 %644 }
 0x471   : > { %1245 = vrcp.f32 %v645_v49 }
 0x474   : > { %v650_v50 = vpop.permute.xlu0 %649 }
 0x475   : > { %v656_v51 = vsel %vm654_vm4, %v650_v50, 0 }
 0x476   : > { %1174 = vmatpush3.bf16.msra.mxu0 %v656_v51 }
 0x477   : > { %1187 = vmatprep.subr.bf16.mxu0 %v1263_v9 }
 0x47e   : > { %v1246_v52 = vpop.eup %1245 }
 0x47f   : > { %v647_v53 = vmul.f32 %v1246_v52, %v1244_v46 }
 0x481   : > { %v648_v54 = vpack.c.bf16 %v647_v53, %v647_v53 }
 0x483   : > { %1176 = vmatmul.mubr.msk.bf16.vlgmr.msra.gmra.mxu0 %vm636_vm3, %v648_v54 }
 0x484   : > { %1191 = vmatprep.mubr.msk.bf16.mxu0 %vm1264_vm1, %v1263_v9 }
 0x543   : > { %v692_v56 = vpop.f32.mrf.mxu0 }
 0x544   : > { %v698_v57 = vpack.c.bf16 %v692_v56, %v692_v56 }
 0x545   : > { %v1177_v58 = vpop.f32.mrf.mxu0 }
 0x546   : > { %1184 = vmatmul.mubr.msk.bf16.vlgmr.msra.gmra.mxu1 %vm481_vm0, %v698_v57 }
 0x547   : > { %v695_v59 = vpop.f32.mrf.mxu0  ;;  %1211 = vmatprep.mubr.msk.bf16.mxu1 %vm1264_vm1, %v1263_v9  ;;  %1196 = vmatpush3.bf16.msra.mxu1 %v1233_v21 }
 0x548   : > { %1197 = vmatprep.subr.bf16.mxu1 %v1263_v9 }
 0x549   : > { %v1178_v60 = vpop.f32.mrf.mxu0 }
 0x54b   : > { %1198 = vmatpush3.bf16.msra.mxu1 %v1234_v22 }
 0x54c   : > { %1199 = vmatprep.subr.bf16.mxu1 %v1263_v9 }
 0x54f   : > { %1200 = vmatpush3.bf16.msra.mxu1 %v1235_v23 }
 0x550   : > { %1201 = vmatprep.subr.bf16.mxu1 %v1263_v9 }
 0x553   : > { %1202 = vmatpush3.bf16.msra.mxu1 %v1236_v24 }
 0x554   : > { %1203 = vmatprep.subr.bf16.mxu1 %v1263_v9 }
 0x557   : > { %1204 = vmatpush3.bf16.msra.mxu1 %v1237_v25 }
 0x558   : > { %1205 = vmatprep.subr.bf16.mxu1 %v1263_v9 }
 0x55b   : > { %1206 = vmatpush3.bf16.msra.mxu1 %v1238_v26 }
 0x55c   : > { %1207 = vmatprep.subr.bf16.mxu1 %v1263_v9 }
 0x55f   : > { %1208 = vmatpush3.bf16.msra.mxu1 %v1239_v27 }
 0x560   : > { %1209 = vmatprep.subr.bf16.mxu1 %v1263_v9 }
 0x563   : > { %1210 = vmatpush3.bf16.msra.mxu1 %v1240_v28 }
 0x606   : > { %v752_v61 = vpop.f32.mrf.mxu1 }
 0x607   : > { %v1421_v62 = vadd.f32 %v752_v61, %v1356_v1  ;;  %v1231_v1 = vld [vmem:[%s1504_s4 + $0x8] sm:$0xff]   ;;  %v1021_v61 = vrot.slane %v1394_v29, %v578_v33 }
 0x608   : > { %v1185_v63 = vpop.f32.mrf.mxu1  ;;  %1188 = vmatpush3.bf16.msra.mxu0 %v1231_v1 }
 0x609   : > { %v759_v0 = vsel %vm481_vm0, %v1421_v62, 0.0  ;;  %1189 = vmatprep.subr.bf16.mxu0 %v1263_v9 }
 0x60a   : > { %760 = vadd.xlane.f32.xlu0 %v759_v0  ;;  %v755_v2 = vpop.f32.mrf.mxu1 }
 0x60c   : > { %v1186_v3 = vpop.f32.mrf.mxu1  ;;  %1190 = vmatpush3.bf16.msra.mxu0 %v1232_v10 }
 0x693   : > { %v761_v4 = vpop.xlane.xlu0 %760 }
 0x694   : > { %v762_v5 = vmul.f32 0.03125, %v761_v4  ;;  %v1133_v4 = vld [vmem:[%s1512_s12] ss:$0 sm:$0xff] }
 0x696   : > { %v763_v6 = vsub.f32 %v1421_v62, %v762_v5 }
 0x698   : > { %v764_v7 = vmul.f32 %v763_v6, %v763_v6 }
 0x69a   : > { %v765_v8 = vsel %vm481_vm0, %v764_v7, 0.0 }
 0x69b   : > { %766 = vadd.xlane.f32.xlu1 %v765_v8 }
 0x724   : > { %v767_v11 = vpop.xlane.xlu1 %766 }
 0x725   : > { %v768_v12 = vmul.f32 0.03125, %v767_v11 }
 0x727   : > { %v769_v13 = vadd.f32 1e-05, %v768_v12 }
 0x729   : > { %1247 = vrsqrt.f32 %v769_v13 }
 0x736   : > { %v1248_v14 = vpop.eup %1247 }
 0x737   : > { %v771_v16 = vmul.f32 %v1248_v14, %v763_v6  ;;  %v1134_v6 = vld [vmem:[%s1513_s13] ss:$0 sm:$0xff] }
 0x739   : > { %v779_v18 = vmul.f32 %v1118_v15, %v771_v16 }
 0x73b   : > { %v787_v19 = vadd.f32 %v1119_v17, %v779_v18 }
 0x73d   : > { %v788_v20 = vpack.c.bf16 %v787_v19, %v787_v19 }
 0x73f   : > { %1192 = vmatmul.mubr.msk.bf16.vlgmr.msra.gmra.mxu0 %vm481_vm0, %v788_v20 }
 0x7ff   : > { %v849_v32 = vpop.f32.mrf.mxu0 }
 0x800   : > { %v850_v34 = vadd.f32 %v1120_v30, %v849_v32 }
 0x801   : > { %v1193_v35 = vpop.f32.mrf.mxu0 }
 0x802   : > { %v855_v36 = vmul.f32 %v850_v34, %v850_v34 }
 0x803   : > { %v852_v37 = vpop.f32.mrf.mxu0 }
 0x804   : > { %v856_v38 = vmul.f32 %v855_v36, %v850_v34 }
 0x805   : > { %v1194_v39 = vpop.f32.mrf.mxu0 }
 0x806   : > { %v857_v40 = vmul.f32 0.044715, %v856_v38 }
 0x808   : > { %v858_v41 = vadd.f32 %v857_v40, %v850_v34 }
 0x80a   : > { %v859_v42 = vmul.f32 0.7978846, %v858_v41 }
 0x80c   : > { %1249 = vtanh.f32 %v859_v42 }
 0x819   : > { %v1250_v43 = vpop.eup %1249 }
 0x81a   : > { %v861_v44 = vadd.f32 1.0, %v1250_v43 }
 0x81c   : > { %v862_v45 = vmul.f32 0.5, %v861_v44 }
 0x81e   : > { %v863_v9 = vmul.f32 %v862_v45, %v850_v34 }
 0x820   : > { %v864_v46 = vpack.c.bf16 %v863_v9, %v863_v9 }
 0x822   : > { %1212 = vmatmul.mubr.bf16.vlgmr.msra.gmra.mxu1 %v864_v46 }
 0x8e2   : > { %v970_v48 = vpop.f32.mrf.mxu1 }
 0x8e3   : > { %v971_v49 = vadd.f32 %v1124_v47, %v970_v48 }
 0x8e4   : > { %v1213_v50 = vpop.f32.mrf.mxu1 }
 0x8e5   : > { %v976_v51 = vadd.f32 %v971_v49, %v1421_v62 }
 0x8e6   : > { %v973_v52 = vpop.f32.mrf.mxu1 }
 0x8e7   : > { %v977_v53 = vsel %vm481_vm0, %v976_v51, 0.0 }
 0x8e8   : > { %978 = vadd.xlane.f32.xlu1 %v977_v53  ;;  %v1214_v54 = vpop.f32.mrf.mxu1 }
 0x8ec   : > { %1015 = vadd.xlane.f32.xlu1 %v1014_v55 }
 0x971   : > { %v979_v56 = vpop.xlane.xlu1 %978 }
 0x972   : > { %v980_v57 = vmul.f32 0.03125, %v979_v56 }
 0x974   : > { %v981_v58 = vsub.f32 %v976_v51, %v980_v57 }
 0x975   : > { %v1016_v62 = vpop.xlane.xlu1 %1015 }
 0x976   : > { %v982_v59 = vmul.f32 %v981_v58, %v981_v58  ;;  %v1017_v7 = vmax.f32 %v1016_v62, 1.0 }
 0x978   : > { %v983_v60 = vsel %vm481_vm0, %v982_v59, 0.0 }
 0x979   : > { %984 = vadd.xlane.f32.xlu1 %v983_v60 }
 0x98a   : > { %1023 = vbcast.lane.b32.xlu1 %v1021_v61, 256 }
 0xa02   : > { %v985_v63 = vpop.xlane.xlu1 %984 }
 0xa03   : > { %v986_v0 = vmul.f32 0.03125, %v985_v63 }
 0xa05   : > { %v987_v2 = vadd.f32 1e-05, %v986_v0 }
 0xa06   : > { %v1024_v29 = vpop.permute.xlu1 %1023 }
 0xa07   : > { %1251 = vrsqrt.f32 %v987_v2 }
 0xa08   : > { %1253 = vrcp.f32 %v1017_v7 }
 0xa14   : > { %v1252_v3 = vpop.eup %1251 }
 0xa15   : > { %v989_v5 = vmul.f32 %v1252_v3, %v981_v58  ;;  %v1254_v23 = vpop.eup %1253 }
 0xa17   : > { %v997_v31 = vmul.f32 %v1133_v4, %v989_v5 }
 0xa19   : > { %v1005_v33 = vadd.f32 %v1134_v6, %v997_v31 }
 0xa1b   : > { %v1006_v8 = vsel %vm481_vm0, %v1005_v33, -inf  ;;  %v1025_v1 = vmul.f32 %v1024_v29, %v1005_v33 }
 0xa1c   : > { %v1007_v10 = vrot.slane %v1006_v8, 4 }
 0xa1d   : > { %v1026_v11 = vsel %vm481_vm0, %v1025_v1, 0.0 }
 0xa1e   : > { %v1008_v12 = vmax.f32 %v1006_v8, %v1007_v10  ;;  %v1027_v13 = vrot.slane %v1026_v11, 4 }
 0xa20   : > { %v1009_v14 = vrot.slane %v1008_v12, 2  ;;  %v1028_v15 = vadd.f32 %v1027_v13, %v1026_v11 }
 0xa22   : > { %v1010_v16 = vmax.f32 %v1008_v12, %v1009_v14  ;;  %v1029_v17 = vrot.slane %v1028_v15, 2 }
 0xa24   : > { %v1011_v18 = vrot.slane %v1010_v16, 1  ;;  %v1030_v19 = vadd.f32 %v1029_v17, %v1028_v15 }
 0xa26   : > { %v1012_v20 = vmax.f32 %v1010_v16, %v1011_v18  ;;  %v1031_v21 = vrot.slane %v1030_v19, 1 }
 0xa28   : > { %1036 = vst.msk [vmem:[%s476_s15] sm:$0x1] %vm1035_vm6, %v1012_v20  ;;  %v1032_v22 = vadd.f32 %v1031_v21, %v1030_v19 }
 0xa2a   : > { %v1034_v24 = vmul.f32 %v1254_v23, %v1032_v22 }
 0xa2c   : > { %1037 = vst.msk [vmem:[%s476_s15 + $0x1] sm:$0x1] %vm1035_vm6, %v1034_v24 }
 0xa2d PF: > { %s24_s29 = sadd.s32 1, %s1261_s29  }
 0xa2e   : > { %p21_p4 = scmp.ge.s32.totalorder %s24_s29, 4  }
 0xa30   :  { %23 = sbr.rel (!%p21_p4) target bundleno = 1 (0x1), region = 109 }

// kernel: forward.1
= control target key start
LH: loop header
LB: loop body
LE: loop exit
PB: predicated region body
PF: predicated region fallthrough
CT: control target
= control target key end

     0   :  { %s1342_s29 = smov 0   ;;  %s1500_s0 = inlined_call_operand.vmem [shape: bf16[2,8,32], index: 0, kind: input, shape index: {}]   ;;  %s1501_s1 = inlined_call_operand.vmem [shape: f32[2,1,8], index: 1, kind: input, shape index: {}]   ;;  %s1502_s2 = inlined_call_operand.vmem [shape: bf16[32,96], index: 2, kind: input, shape index: {}]   ;;  %s1503_s3 = inlined_call_operand.vmem [shape: bf16[32,32], index: 3, kind: input, shape index: {}]   ;;  %s1504_s4 = inlined_call_operand.vmem [shape: bf16[32,128], index: 4, kind: input, shape index: {}]   ;;  %s1505_s5 = inlined_call_operand.vmem [shape: f32[1,128], index: 5, kind: input, shape index: {}]   ;;  %s1506_s6 = inlined_call_operand.vmem [shape: bf16[128,32], index: 6, kind: input, shape index: {}]   ;;  %s1507_s7 = inlined_call_operand.vmem [shape: f32[1,32], index: 7, kind: input, shape index: {}]   ;;  %s1508_s8 = inlined_call_operand.vmem [shape: f32[1,32], index: 8, kind: input, shape index: {}]   ;;  %s1509_s9 = inlined_call_operand.vmem [shape: f32[1,32], index: 9, kind: input, shape index: {}]   ;;  %s1510_s10 = inlined_call_operand.vmem [shape: f32[1,32], index: 10, kind: input, shape index: {}]   ;;  %s1511_s11 = inlined_call_operand.vmem [shape: f32[1,32], index: 11, kind: input, shape index: {}]   ;;  %s1512_s12 = inlined_call_operand.vmem [shape: f32[1,32], index: 12, kind: input, shape index: {}]   ;;  %s1513_s13 = inlined_call_operand.vmem [shape: f32[1,32], index: 13, kind: input, shape index: {}]   ;;  %s1514_s14 = inlined_call_operand.vmem [shape: f32[2,2,32], index: 14, kind: output, shape index: {}]  }
   0x1 LB: > { %s1100_s30 = sadd.s32 4294967295, %s1261_s29   ;;  %p1104_p0 = scmp.ge.s32.totalorder %s1261_s29, 1  ;;  %s1261_s29 = sphi %s1342_s29, %s24_s29  }
   0x2   : > { %p419_p1 = scmp.lt.s32.totalorder %s1261_s29, 3 }
   0x4   : > { %p420_p2 = pnand %p1104_p0, %p419_p1 }
   0x5   : > { %p466_p3 = scmp.lt.s32.totalorder (!%p420_p2), %s1100_s30, 1  ;;  %s1265_s27 = smov (!%p420_p2), 96  }
   0x6   : > { %423 = sbr.rel (%p420_p2) target bundleno = 2605 (0xa2d), region = 76  ;;  %s1266_s17 = smov (!%p420_p2), 64  }
   0xb   : > { %s1516_s30 = smov (!%p466_p3, %s1100_s30), 1  ;;  %vm481_vm0 = vcmask 261120   ;;  %v1227_v8 = vld [vmem:[%s1502_s2 + $0x8] sm:$0xff]   ;;  %v1263_v9 = vmov 0.0   ;;  %vm1264_vm1 = vmmov 0   ;;  %v1228_v10 = vld [vmem:[%s1502_s2] sm:$0xff]   ;;  %v576_v28 = vlaneseq }
   0xc   : > { %s1105_s15 = sshll.u32 %s1516_s30, 2  ;;  %1159 = vmatprep.subr.bf16.mxu0 %v1263_v9  ;;  %1163 = vmatprep.mubr.msk.bf16.mxu0 %vm1264_vm1, %v1263_v9  ;;  %v1107_v15 = vld [vmem:[%s1508_s8] ss:$0 sm:$0xff]  ;;  %s472_s16 = scalar_lea.vmem %s1501_s1, %s1516_s30  ;;  %vm636_vm3 = vcmask 64512   ;;  %v1229_v48 = vld [vmem:[%s1503_s3 + $0x8] sm:$0xff]   ;;  %vm654_vm4 = vcmask 1043456  }
   0xd   : > { %s469_s18 = scalar_lea.vmem %s1500_s0, %s1105_s15  ;;  %1160 = vmatpush3.bf16.msra.mxu0 %v1227_v8  ;;  %1179 = vmatprep.subr.bf16.mxu1 %v1263_v9  ;;  %v1108_v17 = vld [vmem:[%s1509_s9] ss:$0 sm:$0xff]  ;;  %v1397_v31 = vshrl.u32 %v576_v28, 7  ;;  %v631_v34 = vand.u32 127, %v576_v28  ;;  %vm1013_vm5 = vcmask 57344   ;;  %s1106_s26 = sshll.u32 %s1516_s30, 1 }
   0xe   : > { %v478_v0 = vld [vmem:[%s469_s18] sm:$0xf]  ;;  %1161 = vmatprep.subr.bf16.mxu0 %v1263_v9  ;;  %1183 = vmatprep.mubr.msk.bf16.mxu1 %vm1264_vm1, %v1263_v9  ;;  %s476_s15 = scalar_lea.vmem %s1514_s14, %s1106_s26  ;;  %vm1035_vm6 = vcmask 253952  }
   0xf   : > { %v1356_v1 = vunpack.c.l.bf16 %v478_v0  ;;  %v1394_v29 = vld [vmem:[%s472_s16] sm:$0x1]  ;;  %v578_v33 = vsub.s32 0, %v1397_v31  ;;  %vm634_vm2 = vcmp.le.s32.totalorder %v631_v34, %v1397_v31  ;;  %1180 = vmatpush3.bf16.msra.mxu1 %v1229_v48 }
  0x10   : > { %v1112_v30 = vadd.f32 -1.0, %v1394_v29  ;;  %1181 = vmatprep.subr.bf16.mxu1 %v1263_v9  ;;  %v1230_v55 = vld [vmem:[%s1503_s3] sm:$0xff]  }
  0x11   : > { %v482_v2 = vsel %vm481_vm0, %v1356_v1, 0.0  ;;  %1162 = vmatpush3.bf16.msra.mxu0 %v1228_v10  ;;  %v1232_v10 = vld [vmem:[%s1504_s4] sm:$0xff]  }
  0x12   : > { %483 = vadd.xlane.f32.xlu0 %v482_v2  ;;  %1167 = vmatprep.subr.bf16.mxu0 %v1263_v9  ;;  %v574_v32 = vmul.f32 1e+09, %v1112_v30  ;;  %v1240_v28 = vld [vmem:[%s1506_s6] sm:$0xff]  }
  0x13   : > { %1182 = vmatpush3.bf16.msra.mxu1 %v1230_v55  ;;  %v1120_v30 = vld [vmem:[%s1505_s5] ss:$0 sm:$0xff]  ;;  %v1014_v55 = vsel %vm1013_vm5, %v1394_v29, 0.0 }
  0x14   : > { %v579_v35 = vrot.slane %v574_v32, %v578_v33  ;;  %1195 = vmatprep.subr.bf16.mxu1 %v1263_v9 }
  0x9b   : > { %v484_v3 = vpop.xlane.xlu0 %483 }
  0x9c   : > { %v486_v4 = vmul.f32 0.03125, %v484_v3 }
  0x9e   : > { %v487_v5 = vsub.f32 %v1356_v1, %v486_v4 }
  0xa0   : > { %v488_v6 = vmul.f32 %v487_v5, %v487_v5 }
  0xa2   : > { %v489_v7 = vsel %vm481_vm0, %v488_v6, 0.0 }
  0xa3   : > { %490 = vadd.xlane.f32.xlu0 %v489_v7 }
 0x12c   : > { %v491_v11 = vpop.xlane.xlu0 %490 }
 0x12d   : > { %v492_v12 = vmul.f32 0.03125, %v491_v11 }
 0x12f   : > { %v493_v13 = vadd.f32 1e-05, %v492_v12 }
 0x131   : > { %1241 = vrsqrt.f32 %v493_v13 }
 0x13e   : > { %v1242_v14 = vpop.eup %1241 }
 0x13f   : > { %v495_v16 = vmul.f32 %v1242_v14, %v487_v5 }
 0x141   : > { %v503_v18 = vmul.f32 %v1107_v15, %v495_v16  ;;  %v1118_v15 = vld [vmem:[%s1510_s10] ss:$0 sm:$0xff] }
 0x143   : > { %v511_v19 = vadd.f32 %v1108_v17, %v503_v18  ;;  %v1119_v17 = vld [vmem:[%s1511_s11] ss:$0 sm:$0xff] }
 0x145   : > { %v512_v20 = vpack.c.bf16 %v511_v19, %v511_v19 }
 0x147   : > { %1164 = vmatmul.mubr.msk.bf16.vlgmr.msra.gmra.mxu0 %vm481_vm0, %v512_v20 }
 0x148   : > { %1169 = vmatprep.mubr.msk.bf16.mxu0 %vm1264_vm1, %v1263_v9 }
 0x207   : > { %v566_v21 = vpop.f32.mrf.mxu0 }
 0x208   : > { %v572_v22 = vpack.c.bf16 %v566_v21, %v566_v21  ;;  %v1233_v21 = vld [vmem:[%s1506_s6 + $0x38] sm:$0xff]  }
 0x209   : > { %v1165_v23 = vpop.f32.mrf.mxu0 }
 0x20a   : > { %582 = vrot.lane.b32.xlu1 %v572_v22, %s1265_s27  ;;  %v1235_v23 = vld [vmem:[%s1506_s6 + $0x28] sm:$0xff]  }
 0x20b   : > { %v569_v24 = vpop.f32.mrf.mxu0 }
 0x20c   : > { %v1236_v24 = vld [vmem:[%s1506_s6 + $0x20] sm:$0xff]  }
 0x20d   : > { %v1166_v25 = vpop.f32.mrf.mxu0 }
 0x20e   : > { %v1237_v25 = vld [vmem:[%s1506_s6 + $0x18] sm:$0xff]  }
 0x27c   : > { %v583_v26 = vpop.permute.xlu1 %582 }
 0x27d   : > { %v588_v27 = vsel %vm481_vm0, %v583_v26, 0  ;;  %v1238_v26 = vld [vmem:[%s1506_s6 + $0x10] sm:$0xff]  }
 0x27e   : > { %1168 = vmatpush3.bf16.xpose.msra.mxu0 %v588_v27  ;;  %v1239_v27 = vld [vmem:[%s1506_s6 + $0x8] sm:$0xff]  }
 0x27f   : > { %1173 = vmatprep.subr.bf16.mxu0 %v1263_v9 }
 0x285   : > { %1170 = vmatmul.mubr.msk.bf16.vlgmr.msra.gmra.mxu0 %vm481_vm0, %v572_v22 }
 0x286   : > { %1175 = vmatprep.mubr.msk.bf16.mxu0 %vm1264_vm1, %v1263_v9 }
 0x345   : > { %v624_v36 = vpop.f32.mrf.mxu0 }
 0x346   : > { %v625_v37 = vadd.f32 %v624_v36, %v579_v35 }
 0x347   : > { %v1171_v38 = vpop.f32.mrf.mxu0 }
 0x348   : > { %v635_v39 = vsel %vm634_vm2, %v625_v37, -1e+09 }
 0x349   : > { %v627_v40 = vpop.f32.mrf.mxu0  ;;  %v637_v41 = vsel %vm636_vm3, %v635_v39, -inf }
 0x34a   : > { %638 = vmax.xlane.f32.xlu1 %v637_v41 }
 0x34b   : > { %v1172_v42 = vpop.f32.mrf.mxu0 }
 0x3d3   : > { %v639_v43 = vpop.xlane.xlu1 %638 }
 0x3d4   : > { %v640_v44 = vsub.f32 %v635_v39, %v639_v43 }
 0x3d6   : > { %v641_v45 = vmul.f32 1.442695, %v640_v44 }
 0x3d8   : > { %1243 = vpow2.f32 %v641_v45 }
 0x3e5   : > { %v1244_v46 = vpop.eup %1243 }
 0x3e6   : > { %v643_v47 = vsel %vm636_vm3, %v1244_v46, 0.0 }
 0x3e7   : > { %644 = vadd.xlane.f32.xlu0 %v643_v47  ;;  %v1124_v47 = vld [vmem:[%s1507_s7] ss:$0 sm:$0xff] }
 0x3fd   : > { %649 = vrot.lane.b32.xlu0 %v572_v22, %s1266_s17  ;;  %v1234_v22 = vld [vmem:[%s1506_s6 + $0x30] sm:$0xff]  }
 0x470   : > { %v645_v49 = vpop.xlane.xlu0 %644 }
 0x471   : > { %1245 = vrcp.f32 %v645_v49 }
 0x474   : > { %v650_v50 = vpop.permute.xlu0 %649 }
 0x475   : > { %v656_v51 = vsel %vm654_vm4, %v650_v50, 0 }
 0x476   : > { %1174 = vmatpush3.bf16.msra.mxu0 %v656_v51 }
 0x477   : > { %1187 = vmatprep.subr.bf16.mxu0 %v1263_v9 }
 0x47e   : > { %v1246_v52 = vpop.eup %1245 }
 0x47f   : > { %v647_v53 = vmul.f32 %v1246_v52, %v1244_v46 }
 0x481   : > { %v648_v54 = vpack.c.bf16 %v647_v53, %v647_v53 }
 0x483   : > { %1176 = vmatmul.mubr.msk.bf16.vlgmr.msra.gmra.mxu0 %vm636_vm3, %v648_v54 }
 0x484   : > { %1191 = vmatprep.mubr.msk.bf16.mxu0 %vm1264_vm1, %v1263_v9 }
 0x543   : > { %v692_v56 = vpop.f32.mrf.mxu0 }
 0x544   : > { %v698_v57 = vpack.c.bf16 %v692_v56, %v692_v56 }
 0x545   : > { %v1177_v58 = vpop.f32.mrf.mxu0 }
 0x546   : > { %1184 = vmatmul.mubr.msk.bf16.vlgmr.msra.gmra.mxu1 %vm481_vm0, %v698_v57 }
 0x547   : > { %v695_v59 = vpop.f32.mrf.mxu0  ;;  %1211 = vmatprep.mubr.msk.bf16.mxu1 %vm1264_vm1, %v1263_v9  ;;  %1196 = vmatpush3.bf16.msra.mxu1 %v1233_v21 }
 0x548   : > { %1197 = vmatprep.subr.bf16.mxu1 %v1263_v9 }
 0x549   : > { %v1178_v60 = vpop.f32.mrf.mxu0 }
 0x54b   : > { %1198 = vmatpush3.bf16.msra.mxu1 %v1234_v22 }
 0x54c   : > { %1199 = vmatprep.subr.bf16.mxu1 %v1263_v9 }
 0x54f   : > { %1200 = vmatpush3.bf16.msra.mxu1 %v1235_v23 }
 0x550   : > { %1201 = vmatprep.subr.bf16.mxu1 %v1263_v9 }
 0x553   : > { %1202 = vmatpush3.bf16.msra.mxu1 %v1236_v24 }
 0x554   : > { %1203 = vmatprep.subr.bf16.mxu1 %v1263_v9 }
 0x557   : > { %1204 = vmatpush3.bf16.msra.mxu1 %v1237_v25 }
 0x558   : > { %1205 = vmatprep.subr.bf16.mxu1 %v1263_v9 }
 0x55b   : > { %1206 = vmatpush3.bf16.msra.mxu1 %v1238_v26 }
 0x55c   : > { %1207 = vmatprep.subr.bf16.mxu1 %v1263_v9 }
 0x55f   : > { %1208 = vmatpush3.bf16.msra.mxu1 %v1239_v27 }
 0x560   : > { %1209 = vmatprep.subr.bf16.mxu1 %v1263_v9 }
 0x563   : > { %1210 = vmatpush3.bf16.msra.mxu1 %v1240_v28 }
 0x606   : > { %v752_v61 = vpop.f32.mrf.mxu1 }
 0x607   : > { %v1421_v62 = vadd.f32 %v752_v61, %v1356_v1  ;;  %v1231_v1 = vld [vmem:[%s1504_s4 + $0x8] sm:$0xff]   ;;  %v1021_v61 = vrot.slane %v1394_v29, %v578_v33 }
 0x608   : > { %v1185_v63 = vpop.f32.mrf.mxu1  ;;  %1188 = vmatpush3.bf16.msra.mxu0 %v1231_v1 }
 0x609   : > { %v759_v0 = vsel %vm481_vm0, %v1421_v62, 0.0  ;;  %1189 = vmatprep.subr.bf16.mxu0 %v1263_v9 }
 0x60a   : > { %760 = vadd.xlane.f32.xlu0 %v759_v0  ;;  %v755_v2 = vpop.f32.mrf.mxu1 }
 0x60c   : > { %v1186_v3 = vpop.f32.mrf.mxu1  ;;  %1190 = vmatpush3.bf16.msra.mxu0 %v1232_v10 }
 0x693   : > { %v761_v4 = vpop.xlane.xlu0 %760 }
 0x694   : > { %v762_v5 = vmul.f32 0.03125, %v761_v4  ;;  %v1133_v4 = vld [vmem:[%s1512_s12] ss:$0 sm:$0xff] }
 0x696   : > { %v763_v6 = vsub.f32 %v1421_v62, %v762_v5 }
 0x698   : > { %v764_v7 = vmul.f32 %v763_v6, %v763_v6 }
 0x69a   : > { %v765_v8 = vsel %vm481_vm0, %v764_v7, 0.0 }
 0x69b   : > { %766 = vadd.xlane.f32.xlu1 %v765_v8 }
 0x724   : > { %v767_v11 = vpop.xlane.xlu1 %766 }
 0x725   : > { %v768_v12 = vmul.f32 0.03125, %v767_v11 }
 0x727   : > { %v769_v13 = vadd.f32 1e-05, %v768_v12 }
 0x729   : > { %1247 = vrsqrt.f32 %v769_v13 }
 0x736   : > { %v1248_v14 = vpop.eup %1247 }
 0x737   : > { %v771_v16 = vmul.f32 %v1248_v14, %v763_v6  ;;  %v1134_v6 = vld [vmem:[%s1513_s13] ss:$0 sm:$0xff] }
 0x739   : > { %v779_v18 = vmul.f32 %v1118_v15, %v771_v16 }
 0x73b   : > { %v787_v19 = vadd.f32 %v1119_v17, %v779_v18 }
 0x73d   : > { %v788_v20 = vpack.c.bf16 %v787_v19, %v787_v19 }
 0x73f   : > { %1192 = vmatmul.mubr.msk.bf16.vlgmr.msra.gmra.mxu0 %vm481_vm0, %v788_v20 }
 0x7ff   : > { %v849_v32 = vpop.f32.mrf.mxu0 }
 0x800   : > { %v850_v34 = vadd.f32 %v1120_v30, %v849_v32 }
 0x801   : > { %v1193_v35 = vpop.f32.mrf.mxu0 }
 0x802   : > { %v855_v36 = vmul.f32 %v850_v34, %v850_v34 }
 0x803   : > { %v852_v37 = vpop.f32.mrf.mxu0 }
 0x804   : > { %v856_v38 = vmul.f32 %v855_v36, %v850_v34 }
 0x805   : > { %v1194_v39 = vpop.f32.mrf.mxu0 }
 0x806   : > { %v857_v40 = vmul.f32 0.044715, %v856_v38 }
 0x808   : > { %v858_v41 = vadd.f32 %v857_v40, %v850_v34 }
 0x80a   : > { %v859_v42 = vmul.f32 0.7978846, %v858_v41 }
 0x80c   : > { %1249 = vtanh.f32 %v859_v42 }
 0x819   : > { %v1250_v43 = vpop.eup %1249 }
 0x81a   : > { %v861_v44 = vadd.f32 1.0, %v1250_v43 }
 0x81c   : > { %v862_v45 = vmul.f32 0.5, %v861_v44 }
 0x81e   : > { %v863_v9 = vmul.f32 %v862_v45, %v850_v34 }
 0x820   : > { %v864_v46 = vpack.c.bf16 %v863_v9, %v863_v9 }
 0x822   : > { %1212 = vmatmul.mubr.bf16.vlgmr.msra.gmra.mxu1 %v864_v46 }
 0x8e2   : > { %v970_v48 = vpop.f32.mrf.mxu1 }
 0x8e3   : > { %v971_v49 = vadd.f32 %v1124_v47, %v970_v48 }
 0x8e4   : > { %v1213_v50 = vpop.f32.mrf.mxu1 }
 0x8e5   : > { %v976_v51 = vadd.f32 %v971_v49, %v1421_v62 }
 0x8e6   : > { %v973_v52 = vpop.f32.mrf.mxu1 }
 0x8e7   : > { %v977_v53 = vsel %vm481_vm0, %v976_v51, 0.0 }
 0x8e8   : > { %978 = vadd.xlane.f32.xlu1 %v977_v53  ;;  %v1214_v54 = vpop.f32.mrf.mxu1 }
 0x8ec   : > { %1015 = vadd.xlane.f32.xlu1 %v1014_v55 }
 0x971   : > { %v979_v56 = vpop.xlane.xlu1 %978 }
 0x972   : > { %v980_v57 = vmul.f32 0.03125, %v979_v56 }
 0x974   : > { %v981_v58 = vsub.f32 %v976_v51, %v980_v57 }
 0x975   : > { %v1016_v62 = vpop.xlane.xlu1 %1015 }
 0x976   : > { %v982_v59 = vmul.f32 %v981_v58, %v981_v58  ;;  %v1017_v7 = vmax.f32 %v1016_v62, 1.0 }
 0x978   : > { %v983_v60 = vsel %vm481_vm0, %v982_v59, 0.0 }
 0x979   : > { %984 = vadd.xlane.f32.xlu1 %v983_v60 }
 0x98a   : > { %1023 = vbcast.lane.b32.xlu1 %v1021_v61, 256 }
 0xa02   : > { %v985_v63 = vpop.xlane.xlu1 %984 }
 0xa03   : > { %v986_v0 = vmul.f32 0.03125, %v985_v63 }
 0xa05   : > { %v987_v2 = vadd.f32 1e-05, %v986_v0 }
 0xa06   : > { %v1024_v29 = vpop.permute.xlu1 %1023 }
 0xa07   : > { %1251 = vrsqrt.f32 %v987_v2 }
 0xa08   : > { %1253 = vrcp.f32 %v1017_v7 }
 0xa14   : > { %v1252_v3 = vpop.eup %1251 }
 0xa15   : > { %v989_v5 = vmul.f32 %v1252_v3, %v981_v58  ;;  %v1254_v23 = vpop.eup %1253 }
 0xa17   : > { %v997_v31 = vmul.f32 %v1133_v4, %v989_v5 }
 0xa19   : > { %v1005_v33 = vadd.f32 %v1134_v6, %v997_v31 }
 0xa1b   : > { %v1006_v8 = vsel %vm481_vm0, %v1005_v33, -inf  ;;  %v1025_v1 = vmul.f32 %v1024_v29, %v1005_v33 }
 0xa1c   : > { %v1007_v10 = vrot.slane %v1006_v8, 4 }
 0xa1d   : > { %v1026_v11 = vsel %vm481_vm0, %v1025_v1, 0.0 }
 0xa1e   : > { %v1008_v12 = vmax.f32 %v1006_v8, %v1007_v10  ;;  %v1027_v13 = vrot.slane %v1026_v11, 4 }
 0xa20   : > { %v1009_v14 = vrot.slane %v1008_v12, 2  ;;  %v1028_v15 = vadd.f32 %v1027_v13, %v1026_v11 }
 0xa22   : > { %v1010_v16 = vmax.f32 %v1008_v12, %v1009_v14  ;;  %v1029_v17 = vrot.slane %v1028_v15, 2 }
 0xa24   : > { %v1011_v18 = vrot.slane %v1010_v16, 1  ;;  %v1030_v19 = vadd.f32 %v1029_v17, %v1028_v15 }
 0xa26   : > { %v1012_v20 = vmax.f32 %v1010_v16, %v1011_v18  ;;  %v1031_v21 = vrot.slane %v1030_v19, 1 }
 0xa28   : > { %1036 = vst.msk [vmem:[%s476_s15] sm:$0x1] %vm1035_vm6, %v1012_v20  ;;  %v1032_v22 = vadd.f32 %v1031_v21, %v1030_v19 }
 0xa2a   : > { %v1034_v24 = vmul.f32 %v1254_v23, %v1032_v22 }
 0xa2c   : > { %1037 = vst.msk [vmem:[%s476_s15 + $0x1] sm:$0x1] %vm1035_vm6, %v1034_v24 }
 0xa2d PF: > { %s24_s29 = sadd.s32 1, %s1261_s29  }
 0xa2e   : > { %p21_p4 = scmp.ge.s32.totalorder %s24_s29, 4  }
 0xa30   :  { %23 = sbr.rel (!%p21_p4) target bundleno = 1 (0x1), region = 109 }

</bundles_post_ra>
